<compile_context>
chip_gen: v7x
topology: tpu7x:2x2x1
jax: 0.10.0
libtpu: 0.0.40
codegen_flags: <defaults>
</compile_context>

<pallas_src>
import functools

import jax
import jax.numpy as jnp
from jax.experimental import pallas as pl
from jax.experimental.pallas import tpu as pltpu


def _round_up(x, m):
    return (x + m - 1) // m * m


def _pad2d(x, rows, cols):
    pr, pc = rows - x.shape[0], cols - x.shape[1]
    if pr or pc:
        x = jnp.pad(x, ((0, pr), (0, pc)))
    return x


def _pick_tile(dim, cap, unit):
    """Largest multiple of `unit` that divides `dim` and is <= cap."""
    t = min(cap, dim)
    t -= t % unit
    while dim % t:
        t -= unit
    return t


def _matmul_bias_act_kernel(*refs, use_bias, apply_relu):
    """K-tiled: acc += A_tile @ B_tile; bias (+ReLU) + store on last K step."""
    if use_bias:
        a_ref, b_ref, bias_ref, o_ref, acc_ref = refs
    else:
        a_ref, b_ref, o_ref, acc_ref = refs
        bias_ref = None

    k = pl.program_id(2)

    @pl.when(k == 0)
    def _():
        acc_ref[...] = jnp.zeros_like(acc_ref)

    acc_ref[...] += jnp.dot(a_ref[...], b_ref[...],
                            preferred_element_type=jnp.float32)

    @pl.when(k == pl.num_programs(2) - 1)
    def _():
        out = acc_ref[...]
        if use_bias:
            out = out + bias_ref[...]
        if apply_relu:
            out = jnp.maximum(out, 0.0)
        o_ref[...] = out.astype(o_ref.dtype)


def matmul_bias_act(a, b, bias=None, *, apply_relu=False,
                    tm_cap=256, tn_cap=256, tk_cap=512):
    """out = a @ b (+ bias) (+ ReLU), one Pallas call.

    a: (M, K), b: (K, N), bias: (1, N) or None.  M must be a multiple of 8,
    K and N multiples of 128 (the wrappers below pad to guarantee this).
    """
    M, K = a.shape
    K2, N = b.shape
    assert K == K2, (a.shape, b.shape)

    tm = _pick_tile(M, tm_cap, 8)
    tn = _pick_tile(N, tn_cap, 128)
    tk = _pick_tile(K, tk_cap, 128)
    grid = (M // tm, N // tn, K // tk)

    use_bias = bias is not None
    kernel = functools.partial(_matmul_bias_act_kernel,
                               use_bias=use_bias, apply_relu=apply_relu)

    in_specs = [
        pl.BlockSpec((tm, tk), lambda i, j, k: (i, k)),
        pl.BlockSpec((tk, tn), lambda i, j, k: (k, j)),
    ]
    operands = [a, b]
    if use_bias:
        assert bias.shape == (1, N), bias.shape
        in_specs.append(pl.BlockSpec((1, tn), lambda i, j, k: (0, j)))
        operands.append(bias)

    itemsize = jnp.dtype(a.dtype).itemsize
    cost = pl.CostEstimate(
        flops=2 * M * N * K,
        transcendentals=0,
        bytes_accessed=(M * K + K * N + M * N + (N if use_bias else 0)) * itemsize,
    )

    return pl.pallas_call(
        kernel,
        out_shape=jax.ShapeDtypeStruct((M, N), a.dtype),
        grid_spec=pltpu.PrefetchScalarGridSpec(
            num_scalar_prefetch=0,
            grid=grid,
            in_specs=in_specs,
            out_specs=pl.BlockSpec((tm, tn), lambda i, j, k: (i, j)),
            scratch_shapes=[pltpu.VMEM((tm, tn), jnp.float32)],
        ),
        compiler_params=pltpu.CompilerParams(
            dimension_semantics=("parallel", "parallel", "arbitrary"),
            vmem_limit_bytes=48 * 1024 * 1024,
        ),
        cost_estimate=cost,
    )(*operands)


def gcn_layer(adjacency_p, features_p, weight, bias, *, apply_relu):
    """One GCN layer on pre-padded inputs.

    adjacency_p: (N_p, N_p), features_p: (N_p, F_in_p) (zero-padded),
    weight: (F_in, F_out), bias: (F_out,) or None.
    Returns (N_p, F_out_p) with the padded columns exactly zero.
    """
    f_in, f_out = weight.shape
    f_in_p = features_p.shape[1]
    f_out_p = _round_up(f_out, 128)

    w_p = _pad2d(weight, f_in_p, f_out_p)
    b_p = _pad2d(bias.reshape(1, f_out), 1, f_out_p) if bias is not None else None

    # H = X @ W, computed once (not per adjacency-row tile).
    h = matmul_bias_act(features_p, w_p)
    # out = A @ H (+ b) (+ ReLU), K-tiled over adjacency columns.
    return matmul_bias_act(adjacency_p, h, b_p, apply_relu=apply_relu)


def net_forward(adjacency, features, params, *, row_tile=256):
    """Matches torch Net.forward: relu(gcn1(A, X)) -> gcn2(A, .)."""
    w1, b1, w2, b2 = params
    n = adjacency.shape[0]
    f_in = features.shape[1]

    n_p = _round_up(n, row_tile)
    f_in_p = _round_up(f_in, 128)

    a_p = _pad2d(adjacency, n_p, n_p)
    x_p = _pad2d(features, n_p, f_in_p)

    h = gcn_layer(a_p, x_p, w1, b1, apply_relu=True)      # (N_p, 128)
    out_p = gcn_layer(a_p, h, w2, b2, apply_relu=False)   # (N_p, 128)
    return out_p[:n, :w2.shape[1]]


def net_reference(adjacency, features, params):
    w1, b1, w2, b2 = params
    hp = jax.lax.Precision.HIGHEST
    h = jnp.maximum(
        jnp.dot(adjacency, jnp.dot(features, w1, precision=hp), precision=hp) + b1,
        0.0)
    return jnp.dot(adjacency, jnp.dot(h, w2, precision=hp), precision=hp) + b2


if __name__ == "__main__":
    # Small deterministic problem: Cora-like dims but only 256 nodes.
    N, F_IN, HID, OUT = 256, 1433, 16, 7
    key = jax.random.PRNGKey(0)
    k_adj, k_x, k_w1, k_w2 = jax.random.split(key, 4)

    # Sparse-ish symmetric adjacency with self-loops (dense stand-in for
    # torch.sparse.mm — numerically identical).
    adj_raw = (jax.random.uniform(k_adj, (N, N)) < 0.05).astype(jnp.float32)
    adjacency = jnp.maximum(adj_raw, adj_raw.T) + jnp.eye(N, dtype=jnp.float32)

    features = jax.random.normal(k_x, (N, F_IN), dtype=jnp.float32)

    # Parameters matching torch reset_parameters():
    #   kaiming_normal_ on (f_in, f_out): fan_in = f_out -> std = sqrt(2/f_out)
    #   bias: zeros_
    w1 = (2.0 / HID) ** 0.5 * jax.random.normal(k_w1, (F_IN, HID), dtype=jnp.float32)
    b1 = jnp.zeros((HID,), dtype=jnp.float32)
    w2 = (2.0 / OUT) ** 0.5 * jax.random.normal(k_w2, (HID, OUT), dtype=jnp.float32)
    b2 = jnp.zeros((OUT,), dtype=jnp.float32)
    params = (w1, b1, w2, b2)

    out = net_forward(adjacency, features, params)
    out = jax.block_until_ready(out)

    ref = net_reference(adjacency, features, params)
    assert out.shape == (N, OUT), out.shape
    err = float(jnp.max(jnp.abs(out - ref)))
    assert jnp.allclose(out, ref, atol=1e-2, rtol=1e-3), f"max abs err = {err}"

    print("KERNEL_OK")
</pallas_src>

<mosaic_0001>
module attributes {stable_mosaic.version = 11 : i64} {
  func.func @_matmul_bias_act_kernel(%arg0: i32, %arg1: i32, %arg2: i32, %arg3: memref<256x512xf32, #tpu.memory_space<vmem>>, %arg4: memref<512x128xf32, #tpu.memory_space<vmem>>, %arg5: memref<256x128xf32, #tpu.memory_space<vmem>>, %arg6: memref<256x128xf32, #tpu.memory_space<vmem>>) attributes {dimension_semantics = [#tpu.dimension_semantics<parallel>, #tpu.dimension_semantics<parallel>, #tpu.dimension_semantics<arbitrary>], iteration_bounds = array<i64: 1, 1, 3>, scalar_prefetch = 0 : i64, scratch_operands = 1 : i64, tpu.core_type = #tpu.core_type<tc>, window_params = [{transform_indices = @transform_0, window_bounds = array<i64: 256, 512>}, {transform_indices = @transform_1, window_bounds = array<i64: 512, 128>}, {transform_indices = @transform_2, window_bounds = array<i64: 256, 128>}]} {
    %c0_i32 = arith.constant 0 : i32
    %0 = arith.cmpi eq, %arg2, %c0_i32 : i32
    %1 = arith.extui %0 : i1 to i32
    %c0_i32_0 = arith.constant 0 : i32
    %2 = arith.cmpi ne, %1, %c0_i32_0 : i32
    scf.if %2 {
      %cst_9 = arith.constant 0.000000e+00 : f32
      %12 = vector.broadcast %cst_9 : f32 to vector<256x128xf32>
      %c0_10 = arith.constant 0 : index
      %c0_11 = arith.constant 0 : index
      %13 = vector.load %arg6[%c0_10, %c0_11] : memref<256x128xf32, #tpu.memory_space<vmem>>, vector<256x128xf32>
      tpu.vector_store %arg6[%c0_10, %c0_11], %12 {strides = array<i32>} : memref<256x128xf32, #tpu.memory_space<vmem>>, vector<256x128xf32>,
    } else {
    }
    %c0 = arith.constant 0 : index
    %c0_1 = arith.constant 0 : index
    %3 = vector.load %arg6[%c0, %c0_1] : memref<256x128xf32, #tpu.memory_space<vmem>>, vector<256x128xf32>
    %c0_2 = arith.constant 0 : index
    %c0_3 = arith.constant 0 : index
    %4 = vector.load %arg3[%c0_2, %c0_3] : memref<256x512xf32, #tpu.memory_space<vmem>>, vector<256x512xf32>
    %c0_4 = arith.constant 0 : index
    %c0_5 = arith.constant 0 : index
    %5 = vector.load %arg4[%c0_4, %c0_5] : memref<512x128xf32, #tpu.memory_space<vmem>>, vector<512x128xf32>
    %cst = arith.constant dense<0.000000e+00> : vector<256x128xf32>
    %6 = tpu.matmul %4, %5, %cst {dimension_numbers = #tpu.dot_dimension_numbers<[1], [0], [0], [1], [0, 0, 1, 1], [], []>} : vector<256x512xf32>, vector<512x128xf32>, vector<256x128xf32> -> vector<256x128xf32>
    %7 = arith.addf %3, %6 : vector<256x128xf32>
    %c0_6 = arith.constant 0 : index
    %c0_7 = arith.constant 0 : index
    %8 = vector.load %arg6[%c0_6, %c0_7] : memref<256x128xf32, #tpu.memory_space<vmem>>, vector<256x128xf32>
    tpu.vector_store %arg6[%c0_6, %c0_7], %7 {strides = array<i32>} : memref<256x128xf32, #tpu.memory_space<vmem>>, vector<256x128xf32>,
    %c2_i32 = arith.constant 2 : i32
    %9 = arith.cmpi eq, %arg2, %c2_i32 : i32
    %10 = arith.extui %9 : i1 to i32
    %c0_i32_8 = arith.constant 0 : i32
    %11 = arith.cmpi ne, %10, %c0_i32_8 : i32
    scf.if %11 {
      %c0_9 = arith.constant 0 : index
      %c0_10 = arith.constant 0 : index
      %12 = vector.load %arg6[%c0_9, %c0_10] : memref<256x128xf32, #tpu.memory_space<vmem>>, vector<256x128xf32>
      %c0_11 = arith.constant 0 : index
      %c0_12 = arith.constant 0 : index
      %13 = vector.load %arg5[%c0_11, %c0_12] : memref<256x128xf32, #tpu.memory_space<vmem>>, vector<256x128xf32>
      tpu.vector_store %arg5[%c0_11, %c0_12], %12 {strides = array<i32>} : memref<256x128xf32, #tpu.memory_space<vmem>>, vector<256x128xf32>,
    } else {
    }
    return
  }
  func.func @transform_0(%arg0: i32, %arg1: i32, %arg2: i32) -> (i32, i32) {
    %c0_i32 = arith.constant 0 : i32
    return %arg0, %arg2 : i32, i32
  }
  func.func @transform_1(%arg0: i32, %arg1: i32, %arg2: i32) -> (i32, i32) {
    %c0_i32 = arith.constant 0 : i32
    return %arg2, %arg1 : i32, i32
  }
  func.func @transform_2(%arg0: i32, %arg1: i32, %arg2: i32) -> (i32, i32) {
    %c0_i32 = arith.constant 0 : i32
    return %arg0, %arg1 : i32, i32
  }
}

</mosaic_0001>

<bundles_post_ra>
// kernel: tpu_custom_call.1
= control target key start
LH: loop header
LB: loop body
LE: loop exit
PB: predicated region body
PF: predicated region fallthrough
CT: control target
= control target key end

     0   :  { %7 = vsyncpa [#allocation4], 0  ;;  %s1971_s0 = inlined_call_operand.hbm [shape: f32[256,1536], index: 0, kind: input, shape index: {}]   ;;  %s1972_s1 = inlined_call_operand.hbm [shape: f32[1536,128], index: 1, kind: input, shape index: {}]   ;;  %s1973_s2 = inlined_call_operand.hbm [shape: f32[256,128], index: 2, kind: output, shape index: {}]  }
   0x1   :  { %9 = vsyncpa [#allocation4 + $0x1], 0 }
   0x2   :  { %10 = vsyncpa [#allocation7], 0 }
   0x3   :  { %12 = vsyncpa [#allocation7 + $0x1], 0 }
   0x4   :  { %13 = vsyncpa [#allocation5], 0  ;;  %s1542_s9 = smov 0   ;;  %s1544_s10 = smov 0  }
   0x5   :  { %s1546_s11 = smov 0   ;;  %s1548_s12 = smov 0  }
   0x6   :  { %s1550_s13 = smov 0   ;;  %s1552_s14 = smov 0  }
   0x7 LB: > { %s1177_s15 = sadd.s32 4294967295, %s1513_s14   ;;  %s31_s16 = sadd.s32 1, %s1509_s13  ;;  %s1513_s14 = sphi %s1552_s14, %s19_s14   ;;  %s1509_s13 = sphi %s1550_s13, %s1986_s13   ;;  %s1505_s12 = sphi %s1548_s12, %s1985_s12   ;;  %s1501_s11 = sphi %s1546_s11, %s1984_s11   ;;  %s1497_s10 = sphi %s1544_s10, %s1983_s10   ;;  %s1493_s9 = sphi %s1542_s9, %s1982_s9  }
   0x8   : > { %p32_p0 = scmp.ge.s32.totalorder %s31_s16, 3  ;;  %s47_s17 = sadd.s32 1, %s1501_s11 }
   0x9   : > { %p54_p1 = scmp.ne.s32.totalorder %s1501_s11, %s1497_s10  ;;  %p55_p2 = scmp.eq.s32.totalorder %s1513_s14, 0 }
   0xa   : > { %s1988_s16 = smov (%p32_p0, %s31_s16), 0  ;;  %p60_p4 = scmp.ne.s32.totalorder %s1497_s10, %s1493_s9 }
   0xb   : > { %p1578_p3 = por %p55_p2, %p54_p1  ;;  %s43_s19 = ssub.s32 %s1509_s13, %s1988_s16 }
   0xc   : > { %p61_p5 = scmp.eq.s32.totalorder %s1177_s15, 0  ;;  %p45_p6 = scmp.eq.s32.totalorder %s43_s19, 0 }
   0xd   : > { %p1308_p8 = scmp.lt.s32.totalorder %s1513_s14, 3  ;;  %s1596_s22 = sand.u32 1, %s1501_s11  }
   0xe   : > { %p1587_p7 = por %p61_p5, %p60_p4  ;;  %s1195_s23 = sshll.u32 %s1509_s13, 9 }
   0xf   : > { %s1593_s21 = scalar_select %p45_p6, %s1501_s11, %s47_s17  }
  0x10   : > { %s1976_s20 = scalar_select %p1587_p7, 1, 0 }
  0x11   : > { %s1180_s24 = sshll.u32 %s1596_s22, 10  ;;  %s1603_s27 = scalar_lea.hbm %s1971_s0, %s1195_s23 }
  0x12   : > { %s144_s28 = scalar_lea.vmem [#allocation3], %s1180_s24  ;;  %p1607_p9 = pnand %p1308_p8, %p1578_p3 }
  0x13   : > { %s154_s29 = sshll.u32 %s144_s28, 4  ;;  %s141_s3 = scalar_lea.sflag [#allocation4], %s1596_s22  ;;  %s1611_s29 = int_to_ptr.vmem [resolvable:$true] %s154_s29 }
  0x14   : > { %s1369_s4 = scalar_lea.hbm %s1603_s27, 16384  ;;  %p1371_p12 = pneg %p1607_p9 }
  0x15   : > { %p1370_p11 = scmp.ne.s32.totalorder %s1603_s27, %s1369_s4  ;;  %s1374_s7 = scalar_lea.hbm %s1971_s0, 49152 }
  0x16   : > { %p1375_p1 = scmp.lt.u32.totalorder %s1603_s27, %s1971_s0  ;;  %p1376_p2 = scmp.lt.u32.totalorder %s1374_s7, %s1369_s4 }
  0x17   : > { %p1372_p13 = pnand %p1371_p12, %p1370_p11  ;;  %p1378_p4 = scmp.lt.u32.totalorder %s1369_s4, %s1603_s27 }
  0x18   : > { %p1377_p3 = por %p1376_p2, %p1375_p1 }
  0x19   : > { %p1373_p0 = pneg %p1372_p13 }
  0x1a   : > { %p1379_p5 = por %p1378_p4, %p1377_p3 }
  0x1c   : > { %p1380_p6 = pnand %p1379_p5, %p1373_p0 }
  0x1e   : > { %1383 = shalt.err (!%p1380_p6)
}
  0x1f   : > { %s1384_s17 = scalar_lea.vmem %s1611_s29, 16384  ;;  %s1515_s18 = smov [#allocation3]  }
  0x20   : > { %p1385_p8 = scmp.ne.s32.totalorder %s1611_s29, %s1384_s17  ;;  %s1389_s19 = sshll.u32 %s1515_s18, 4  ;;  %s1390_s19 = int_to_ptr.vmem [resolvable:$false] %s1389_s19 }
  0x21   : > { %s1391_s23 = scalar_lea.vmem %s1390_s19, 32768  ;;  %p1392_p10 = scmp.lt.s32.totalorder %s1611_s29, %s1390_s19 }
  0x22   : > { %p1387_p11 = pnand %p1385_p8, %p1371_p12  ;;  %p1393_p1 = scmp.lt.s32.totalorder %s1391_s23, %s1384_s17 }
  0x24   : > { %p1388_p13 = pneg %p1387_p11  ;;  %p1394_p2 = por %p1393_p1, %p1392_p10 }
  0x26   : > { %p1395_p3 = pnand %p1394_p2, %p1388_p13 }
  0x28   : > { %1398 = shalt.err (!%p1395_p3)
}
  0x29   : > { %s1516_s24 = smov 1536   ;;  %s1517_s25 = smov 512  }
  0x2a   : > { %s1518_s26 = smov 32   ;;  %p184_p0 = scmp.lt.s32.totalorder %s1513_s14, 4 }
  0x2b   : > { %1304 = dma.hbm_to_vmem [thread:$0]  (!%p1607_p9), %s1603_s27, 16384, %s1611_s29, %s141_s3, %s1516_s24, %s1517_s25, %s1518_s26  }
  0x2c   : > { %s1183_s28 = sshll.u32 %s1596_s22, 9  ;;  %s1196_s4 = sshll.u32 %s1509_s13, 13 }
  0x2d   : > { %p1978_p10 = scmp.ge.s32.totalorder %s1513_s14, 1  ;;  %s1654_s8 = scalar_lea.hbm %s1972_s1, %s1196_s4 }
  0x2e   : > { %s168_s9 = scalar_lea.vmem [#allocation6], %s1183_s28  ;;  %s165_s27 = scalar_lea.sflag [#allocation7], %s1596_s22 }
  0x2f   : > { %p1647_p4 = pnand %p1978_p10, %p184_p0  ;;  %s176_s17 = sshll.u32 %s168_s9, 4  ;;  %s1656_s17 = int_to_ptr.vmem [resolvable:$true] %s176_s17 }
  0x30   : > { %s1399_s29 = scalar_lea.hbm %s1654_s8, 8192  ;;  %s1404_s19 = scalar_lea.hbm %s1972_s1, 24576 }
  0x31   : > { %p1400_p5 = scmp.ne.s32.totalorder %s1654_s8, %s1399_s29  ;;  %p1405_p11 = scmp.lt.u32.totalorder %s1654_s8, %s1972_s1 }
  0x32   : > { %p1406_p13 = scmp.lt.u32.totalorder %s1404_s19, %s1399_s29  ;;  %p1408_p2 = scmp.lt.u32.totalorder %s1399_s29, %s1654_s8 }
  0x33   : > { %p1402_p6 = pnand %p1400_p5, %p1371_p12 }
  0x34   : > { %p1407_p1 = por %p1406_p13, %p1405_p11 }
  0x35   : > { %p1403_p8 = pneg %p1402_p6 }
  0x36   : > { %p1409_p3 = por %p1408_p2, %p1407_p1 }
  0x38   : > { %p1410_p0 = pnand %p1409_p3, %p1403_p8 }
  0x3a   : > { %1413 = shalt.err (!%p1410_p0)
}
  0x3b   : > { %s1414_s25 = scalar_lea.vmem %s1656_s17, 8192  ;;  %s1519_s26 = smov [#allocation6]  }
  0x3c   : > { %p1415_p10 = scmp.ne.s32.totalorder %s1656_s17, %s1414_s25  ;;  %s1419_s28 = sshll.u32 %s1519_s26, 4  ;;  %s1420_s28 = int_to_ptr.vmem [resolvable:$false] %s1419_s28 }
  0x3d   : > { %s1421_s4 = scalar_lea.vmem %s1420_s28, 16384  ;;  %p1422_p7 = scmp.lt.s32.totalorder %s1656_s17, %s1420_s28 }
  0x3e   : > { %p1417_p5 = pnand %p1415_p10, %p1371_p12  ;;  %p1423_p11 = scmp.lt.s32.totalorder %s1421_s4, %s1414_s25 }
  0x40   : > { %p1418_p6 = pneg %p1417_p5  ;;  %p1424_p13 = por %p1423_p11, %p1422_p7 }
  0x42   : > { %p1425_p1 = pnand %p1424_p13, %p1418_p6 }
  0x44   : > { %1428 = shalt.err (!%p1425_p1)
}
  0x45   : > { %s1520_s6 = smov 128   ;;  %s1521_s7 = smov 8  }
  0x46   : > { %1307 = dma.hbm_to_vmem [thread:$0]  (!%p1607_p9), %s1654_s8, 8192, %s1656_s17, %s165_s27, %s1520_s6, %s1520_s6, %s1521_s7  }
  0x47   : > { %188 = sbr.rel (%p1647_p4) target bundleno = 542 (0x21e), region = 28  ;;  %s190_s9 = sand.u32 (!%p1647_p4), 1, %s1497_s10  }
  0x48   : > { %s1187_s29 = sshll.u32 (!%p1647_p4), %s190_s9, 10  ;;  %s191_s3 = scalar_lea.sflag (!%p1647_p4), [#allocation4], %s190_s9 }
  0x49   : > { %s1687_s18 = scalar_lea.vmem (!%p1647_p4), [#allocation3], %s1187_s29  ;;  %p1980_p7 = scmp.ne.s32.totalorder (!%p1647_p4), %s1976_s20, 0 }
  0x4e   : > { %1480 = dma.done.wait (%p1980_p7), %s191_s3, 16384  }
  0x4f   : > { %1482 = vsyncadd (%p1980_p7), %s191_s3, 4294950912  ;;  %s1188_s19 = sshll.u32 %s190_s9, 9  ;;  %s200_s30 = scalar_lea.sflag [#allocation7], %s190_s9 }
  0x50   : > { %s1693_s22 = scalar_lea.vmem [#allocation6], %s1188_s19 }
  0x51   : > { %1484 = dma.done.wait (%p1980_p7), %s200_s30, 8192  }
  0x52   : > { %1486 = vsyncadd (%p1980_p7), %s200_s30, 4294959104  ;;  %p1189_p9 = scmp.ne.s32.totalorder %s1505_s12, 0 }
  0x53   : > { %v1522_v0 = vmov (!%p1189_p9), 0.0  }
  0x54   : > { %231 = sbr.rel (%p1189_p9) target bundleno = 100 (0x64), region = 40  ;;  %232 = vst [vmem:[#allocation2] sm:$0xff] (!%p1189_p9), %v1522_v0  ;;  %233 = vst [vmem:[#allocation2 + $0x8] sm:$0xff] (!%p1189_p9), %v1522_v0 }
  0x55   : > { %234 = vst [vmem:[#allocation2 + $0x10] sm:$0xff] (!%p1189_p9), %v1522_v0  ;;  %235 = vst [vmem:[#allocation2 + $0x18] sm:$0xff] (!%p1189_p9), %v1522_v0 }
  0x56   : > { %236 = vst [vmem:[#allocation2 + $0x20] sm:$0xff] (!%p1189_p9), %v1522_v0  ;;  %237 = vst [vmem:[#allocation2 + $0x28] sm:$0xff] (!%p1189_p9), %v1522_v0 }
  0x57   : > { %238 = vst [vmem:[#allocation2 + $0x30] sm:$0xff] (!%p1189_p9), %v1522_v0  ;;  %239 = vst [vmem:[#allocation2 + $0x38] sm:$0xff] (!%p1189_p9), %v1522_v0 }
  0x58   : > { %240 = vst [vmem:[#allocation2 + $0x40] sm:$0xff] (!%p1189_p9), %v1522_v0  ;;  %241 = vst [vmem:[#allocation2 + $0x48] sm:$0xff] (!%p1189_p9), %v1522_v0 }
  0x59   : > { %242 = vst [vmem:[#allocation2 + $0x50] sm:$0xff] (!%p1189_p9), %v1522_v0  ;;  %243 = vst [vmem:[#allocation2 + $0x58] sm:$0xff] (!%p1189_p9), %v1522_v0 }
  0x5a   : > { %244 = vst [vmem:[#allocation2 + $0x60] sm:$0xff] (!%p1189_p9), %v1522_v0  ;;  %245 = vst [vmem:[#allocation2 + $0x68] sm:$0xff] (!%p1189_p9), %v1522_v0 }
  0x5b   : > { %246 = vst [vmem:[#allocation2 + $0x70] sm:$0xff] %v1522_v0  ;;  %247 = vst [vmem:[#allocation2 + $0x78] sm:$0xff] %v1522_v0 }
  0x5c   : > { %248 = vst [vmem:[#allocation2 + $0x80] sm:$0xff] %v1522_v0  ;;  %249 = vst [vmem:[#allocation2 + $0x88] sm:$0xff] %v1522_v0 }
  0x5d   : > { %250 = vst [vmem:[#allocation2 + $0x90] sm:$0xff] %v1522_v0  ;;  %251 = vst [vmem:[#allocation2 + $0x98] sm:$0xff] %v1522_v0 }
  0x5e   : > { %252 = vst [vmem:[#allocation2 + $0xa0] sm:$0xff] %v1522_v0  ;;  %253 = vst [vmem:[#allocation2 + $0xa8] sm:$0xff] %v1522_v0 }
  0x5f   : > { %254 = vst [vmem:[#allocation2 + $0xb0] sm:$0xff] %v1522_v0  ;;  %255 = vst [vmem:[#allocation2 + $0xb8] sm:$0xff] %v1522_v0 }
  0x60   : > { %256 = vst [vmem:[#allocation2 + $0xc0] sm:$0xff] %v1522_v0  ;;  %257 = vst [vmem:[#allocation2 + $0xc8] sm:$0xff] %v1522_v0 }
  0x61   : > { %258 = vst [vmem:[#allocation2 + $0xd0] sm:$0xff] %v1522_v0  ;;  %259 = vst [vmem:[#allocation2 + $0xd8] sm:$0xff] %v1522_v0 }
  0x62   : > { %260 = vst [vmem:[#allocation2 + $0xe0] sm:$0xff] %v1522_v0  ;;  %261 = vst [vmem:[#allocation2 + $0xe8] sm:$0xff] %v1522_v0 }
  0x63   : > { %262 = vst [vmem:[#allocation2 + $0xf0] sm:$0xff] %v1522_v0  ;;  %263 = vst [vmem:[#allocation2 + $0xf8] sm:$0xff] %v1522_v0 }
  0x64 PF: > { %v424_v1 = vld [vmem:[%s1693_s22] sm:$0xff]  ;;  %v425_v2 = vld [vmem:[%s1693_s22 + $0x8] sm:$0xff]  ;;  %v1523_v4 = vmov 0.0|0.0   ;;  %v426_v7 = vld [vmem:[%s1693_s22 + $0x10] sm:$0xff]  ;;  %p1190_p12 = scmp.ne.s32.totalorder %s1505_s12, 2 }
  0x65   : > { %v456_v3 = vld [vmem:[%s1693_s22 + $0x100] sm:$0xff]  ;;  %1197 = vmatprep.subr.bf16.mxu0 %v1523_v4  ;;  %1245 = vmatprep.subr.bf16.mxu1 %v1523_v4  ;;  %v1198_v5 = vpack.c.bf16 %v425_v2, %v424_v1  ;;  %v457_v6 = vld [vmem:[%s1693_s22 + $0x108] sm:$0xff]  ;;  %v427_v8 = vld [vmem:[%s1693_s22 + $0x18] sm:$0xff] }
  0x66   : > { %v1246_v9 = vpack.c.bf16 %v457_v6, %v456_v3  ;;  %v458_v10 = vld [vmem:[%s1693_s22 + $0x110] sm:$0xff]  ;;  %v459_v11 = vld [vmem:[%s1693_s22 + $0x118] sm:$0xff]  ;;  %v1201_v12 = vpack.c.bf16 %v427_v8, %v426_v7  ;;  %v428_v14 = vld [vmem:[%s1693_s22 + $0x20] sm:$0xff] }
  0x67   : > { %1199 = vmatpush1.bf16.msra.mxu0 %v1198_v5  ;;  %v1249_v13 = vpack.c.bf16 %v459_v11, %v458_v10  ;;  %v429_v15 = vld [vmem:[%s1693_s22 + $0x28] sm:$0xff]  ;;  %v460_v16 = vld [vmem:[%s1693_s22 + $0x120] sm:$0xff]  ;;  %v430_v20 = vld [vmem:[%s1693_s22 + $0x30] sm:$0xff] }
  0x68   : > { %1247 = vmatpush1.bf16.msra.mxu1 %v1246_v9  ;;  %1200 = vmatprep.subr.bf16.mxu0 %v1523_v4  ;;  %v461_v17 = vld [vmem:[%s1693_s22 + $0x128] sm:$0xff]  ;;  %v1204_v18 = vpack.c.bf16 %v429_v15, %v428_v14  ;;  %v431_v21 = vld [vmem:[%s1693_s22 + $0x38] sm:$0xff]  ;;  %v462_v22 = vld [vmem:[%s1693_s22 + $0x130] sm:$0xff] }
  0x69   : > { %1248 = vmatprep.subr.bf16.mxu1 %v1523_v4  ;;  %v1252_v19 = vpack.c.bf16 %v461_v17, %v460_v16  ;;  %v463_v23 = vld [vmem:[%s1693_s22 + $0x138] sm:$0xff]  ;;  %v1207_v24 = vpack.c.bf16 %v431_v21, %v430_v20  ;;  %v432_v26 = vld [vmem:[%s1693_s22 + $0x40] sm:$0xff]  ;;  %v433_v27 = vld [vmem:[%s1693_s22 + $0x48] sm:$0xff] }
  0x6a   : > { %v1255_v25 = vpack.c.bf16 %v463_v23, %v462_v22  ;;  %v464_v28 = vld [vmem:[%s1693_s22 + $0x140] sm:$0xff]  ;;  %v465_v29 = vld [vmem:[%s1693_s22 + $0x148] sm:$0xff]  ;;  %v1210_v30 = vpack.c.bf16 %v433_v27, %v432_v26  ;;  %v434_v32 = vld [vmem:[%s1693_s22 + $0x50] sm:$0xff] }
  0x6b   : > { %1202 = vmatpush1.bf16.msra.mxu0 %v1201_v12  ;;  %v1258_v31 = vpack.c.bf16 %v465_v29, %v464_v28  ;;  %v435_v33 = vld [vmem:[%s1693_s22 + $0x58] sm:$0xff]  ;;  %v466_v34 = vld [vmem:[%s1693_s22 + $0x150] sm:$0xff]  ;;  %v436_v38 = vld [vmem:[%s1693_s22 + $0x60] sm:$0xff] }
  0x6c   : > { %1250 = vmatpush1.bf16.msra.mxu1 %v1249_v13  ;;  %1203 = vmatprep.subr.bf16.mxu0 %v1523_v4  ;;  %v467_v35 = vld [vmem:[%s1693_s22 + $0x158] sm:$0xff]  ;;  %v1213_v36 = vpack.c.bf16 %v435_v33, %v434_v32  ;;  %v437_v39 = vld [vmem:[%s1693_s22 + $0x68] sm:$0xff]  ;;  %v468_v40 = vld [vmem:[%s1693_s22 + $0x160] sm:$0xff] }
  0x6d   : > { %1251 = vmatprep.subr.bf16.mxu1 %v1523_v4  ;;  %v1261_v37 = vpack.c.bf16 %v467_v35, %v466_v34  ;;  %v469_v41 = vld [vmem:[%s1693_s22 + $0x168] sm:$0xff]  ;;  %v299_v43 = vld [vmem:[%s1687_s18 + $0x18] sm:$0xff]  ;;  %v1216_v44 = vpack.c.bf16 %v437_v39, %v436_v38  ;;  %v438_v46 = vld [vmem:[%s1693_s22 + $0x70] sm:$0xff] }
  0x6e   : > { %v297_v42 = vld [vmem:[%s1687_s18 + $0x8] sm:$0xff]  ;;  %777 = vmatprep.mubr.f32.mxu1 %v299_v43  ;;  %v1264_v45 = vpack.c.bf16 %v469_v41, %v468_v40  ;;  %v439_v47 = vld [vmem:[%s1693_s22 + $0x78] sm:$0xff]  ;;  %v470_v48 = vld [vmem:[%s1693_s22 + $0x170] sm:$0xff] }
  0x6f   : > { %1205 = vmatpush1.bf16.msra.mxu0 %v1204_v18  ;;  %552 = vmatprep.mubr.f32.mxu0 %v297_v42  ;;  %v471_v49 = vld [vmem:[%s1693_s22 + $0x178] sm:$0xff]  ;;  %v1219_v50 = vpack.c.bf16 %v439_v47, %v438_v46  ;;  %v440_v52 = vld [vmem:[%s1693_s22 + $0x80] sm:$0xff]  ;;  %v441_v53 = vld [vmem:[%s1693_s22 + $0x88] sm:$0xff] }
  0x70   : > { %1253 = vmatpush1.bf16.msra.mxu1 %v1252_v19  ;;  %1206 = vmatprep.subr.bf16.mxu0 %v1523_v4  ;;  %v1267_v51 = vpack.c.bf16 %v471_v49, %v470_v48  ;;  %v472_v54 = vld [vmem:[%s1693_s22 + $0x180] sm:$0xff]  ;;  %v473_v55 = vld [vmem:[%s1693_s22 + $0x188] sm:$0xff]  ;;  %v1222_v56 = vpack.c.bf16 %v441_v53, %v440_v52  ;;  %v442_v58 = vld [vmem:[%s1693_s22 + $0x90] sm:$0xff] }
  0x71   : > { %1254 = vmatprep.subr.bf16.mxu1 %v1523_v4  ;;  %v1270_v57 = vpack.c.bf16 %v473_v55, %v472_v54  ;;  %v443_v59 = vld [vmem:[%s1693_s22 + $0x98] sm:$0xff]  ;;  %v474_v60 = vld [vmem:[%s1693_s22 + $0x190] sm:$0xff]  ;;  %v444_v0 = vld [vmem:[%s1693_s22 + $0xa0] sm:$0xff] }
  0x72   : > { %v475_v61 = vld [vmem:[%s1693_s22 + $0x198] sm:$0xff]  ;;  %v1225_v62 = vpack.c.bf16 %v443_v59, %v442_v58  ;;  %v445_v1 = vld [vmem:[%s1693_s22 + $0xa8] sm:$0xff]  ;;  %v476_v2 = vld [vmem:[%s1693_s22 + $0x1a0] sm:$0xff] }
  0x73   : > { %1208 = vmatpush1.bf16.msra.mxu0 %v1207_v24  ;;  %v1273_v63 = vpack.c.bf16 %v475_v61, %v474_v60  ;;  %v477_v3 = vld [vmem:[%s1693_s22 + $0x1a8] sm:$0xff]  ;;  %v1228_v5 = vpack.c.bf16 %v445_v1, %v444_v0  ;;  %v446_v7 = vld [vmem:[%s1693_s22 + $0xb0] sm:$0xff]  ;;  %v447_v8 = vld [vmem:[%s1693_s22 + $0xb8] sm:$0xff] }
  0x74   : > { %1256 = vmatpush1.bf16.msra.mxu1 %v1255_v25  ;;  %1209 = vmatprep.subr.bf16.mxu0 %v1523_v4  ;;  %v1276_v6 = vpack.c.bf16 %v477_v3, %v476_v2  ;;  %v478_v9 = vld [vmem:[%s1693_s22 + $0x1b0] sm:$0xff]  ;;  %v479_v10 = vld [vmem:[%s1693_s22 + $0x1b8] sm:$0xff]  ;;  %v1231_v11 = vpack.c.bf16 %v447_v8, %v446_v7  ;;  %v448_v13 = vld [vmem:[%s1693_s22 + $0xc0] sm:$0xff] }
  0x75   : > { %1257 = vmatprep.subr.bf16.mxu1 %v1523_v4  ;;  %v1279_v12 = vpack.c.bf16 %v479_v10, %v478_v9  ;;  %v449_v14 = vld [vmem:[%s1693_s22 + $0xc8] sm:$0xff]  ;;  %v480_v15 = vld [vmem:[%s1693_s22 + $0x1c0] sm:$0xff]  ;;  %v450_v19 = vld [vmem:[%s1693_s22 + $0xd0] sm:$0xff] }
  0x76   : > { %v481_v16 = vld [vmem:[%s1693_s22 + $0x1c8] sm:$0xff]  ;;  %v1234_v17 = vpack.c.bf16 %v449_v14, %v448_v13  ;;  %v451_v20 = vld [vmem:[%s1693_s22 + $0xd8] sm:$0xff]  ;;  %v482_v21 = vld [vmem:[%s1693_s22 + $0x1d0] sm:$0xff] }
  0x77   : > { %1211 = vmatpush1.bf16.msra.mxu0 %v1210_v30  ;;  %v1282_v18 = vpack.c.bf16 %v481_v16, %v480_v15  ;;  %v483_v22 = vld [vmem:[%s1693_s22 + $0x1d8] sm:$0xff]  ;;  %v1237_v23 = vpack.c.bf16 %v451_v20, %v450_v19  ;;  %v452_v25 = vld [vmem:[%s1693_s22 + $0xe0] sm:$0xff]  ;;  %v453_v26 = vld [vmem:[%s1693_s22 + $0xe8] sm:$0xff] }
  0x78   : > { %1259 = vmatpush1.bf16.msra.mxu1 %v1258_v31  ;;  %1212 = vmatprep.subr.bf16.mxu0 %v1523_v4  ;;  %v1285_v24 = vpack.c.bf16 %v483_v22, %v482_v21  ;;  %v484_v27 = vld [vmem:[%s1693_s22 + $0x1e0] sm:$0xff]  ;;  %v485_v28 = vld [vmem:[%s1693_s22 + $0x1e8] sm:$0xff]  ;;  %v1240_v29 = vpack.c.bf16 %v453_v26, %v452_v25  ;;  %v454_v31 = vld [vmem:[%s1693_s22 + $0xf0] sm:$0xff] }
  0x79   : > { %1260 = vmatprep.subr.bf16.mxu1 %v1523_v4  ;;  %v1288_v30 = vpack.c.bf16 %v485_v28, %v484_v27  ;;  %v455_v32 = vld [vmem:[%s1693_s22 + $0xf8] sm:$0xff]  ;;  %v486_v33 = vld [vmem:[%s1693_s22 + $0x1f0] sm:$0xff]  ;;  %v301_v39 = vld [vmem:[%s1687_s18 + $0x28] sm:$0xff] }
  0x7a   : > { %v487_v34 = vld [vmem:[%s1693_s22 + $0x1f8] sm:$0xff]  ;;  %v1243_v35 = vpack.c.bf16 %v455_v32, %v454_v31  ;;  %v298_v38 = vld [vmem:[%s1687_s18 + $0x10] sm:$0xff]  ;;  %v300_v41 = vld [vmem:[%s1687_s18 + $0x20] sm:$0xff] }
  0x7b   : > { %1214 = vmatpush1.bf16.msra.mxu0 %v1213_v36  ;;  %v1291_v36 = vpack.c.bf16 %v487_v34, %v486_v33  ;;  %v303_v40 = vld [vmem:[%s1687_s18 + $0x38] sm:$0xff]  ;;  %v302_v42 = vld [vmem:[%s1687_s18 + $0x30] sm:$0xff]  ;;  %v305_v43 = vld [vmem:[%s1687_s18 + $0x48] sm:$0xff] }
  0x7c   : > { %1262 = vmatpush1.bf16.msra.mxu1 %v1261_v37  ;;  %1215 = vmatprep.subr.bf16.mxu0 %v1523_v4  ;;  %v296_v37 = vld [vmem:[%s1687_s18] sm:$0xff]  ;;  %v309_v46 = vld [vmem:[%s1687_s18 + $0x68] sm:$0xff]  ;;  %v311_v47 = vld [vmem:[%s1687_s18 + $0x78] sm:$0xff] }
  0x7d   : > { %1263 = vmatprep.subr.bf16.mxu1 %v1523_v4  ;;  %v308_v48 = vld [vmem:[%s1687_s18 + $0x60] sm:$0xff]  ;;  %v310_v49 = vld [vmem:[%s1687_s18 + $0x70] sm:$0xff]  ;;  %v317_v54 = vld [vmem:[%s1687_s18 + $0xa8] sm:$0xff] }
  0x7e   : > { %v312_v52 = vld [vmem:[%s1687_s18 + $0x80] sm:$0xff]  ;;  %v314_v53 = vld [vmem:[%s1687_s18 + $0x90] sm:$0xff]  ;;  %v319_v55 = vld [vmem:[%s1687_s18 + $0xb8] sm:$0xff] }
  0x7f   : > { %1217 = vmatpush1.bf16.msra.mxu0 %v1216_v44  ;;  %v304_v44 = vld [vmem:[%s1687_s18 + $0x40] sm:$0xff]  ;;  %v321_v58 = vld [vmem:[%s1687_s18 + $0xc8] sm:$0xff]  ;;  %v323_v59 = vld [vmem:[%s1687_s18 + $0xd8] sm:$0xff] }
  0x80   : > { %1265 = vmatpush1.bf16.msra.mxu1 %v1264_v45  ;;  %1218 = vmatprep.subr.bf16.mxu0 %v1523_v4  ;;  %v306_v45 = vld [vmem:[%s1687_s18 + $0x50] sm:$0xff]  ;;  %v320_v60 = vld [vmem:[%s1687_s18 + $0xc0] sm:$0xff]  ;;  %v329_v2 = vld [vmem:[%s1687_s18 + $0x108] sm:$0xff] }
  0x81   : > { %1266 = vmatprep.subr.bf16.mxu1 %v1523_v4  ;;  %v322_v61 = vld [vmem:[%s1687_s18 + $0xd0] sm:$0xff]  ;;  %v324_v0 = vld [vmem:[%s1687_s18 + $0xe0] sm:$0xff]  ;;  %v331_v3 = vld [vmem:[%s1687_s18 + $0x118] sm:$0xff] }
  0x82   : > { %v326_v1 = vld [vmem:[%s1687_s18 + $0xf0] sm:$0xff]  ;;  %v333_v7 = vld [vmem:[%s1687_s18 + $0x128] sm:$0xff]  ;;  %v335_v8 = vld [vmem:[%s1687_s18 + $0x138] sm:$0xff] }
  0x83   : > { %1220 = vmatpush1.bf16.msra.mxu0 %v1219_v50  ;;  %v313_v50 = vld [vmem:[%s1687_s18 + $0x88] sm:$0xff]  ;;  %v332_v9 = vld [vmem:[%s1687_s18 + $0x120] sm:$0xff]  ;;  %v334_v10 = vld [vmem:[%s1687_s18 + $0x130] sm:$0xff] }
  0x84   : > { %1268 = vmatpush1.bf16.msra.mxu1 %v1267_v51  ;;  %1221 = vmatprep.subr.bf16.mxu0 %v1523_v4  ;;  %v315_v51 = vld [vmem:[%s1687_s18 + $0x98] sm:$0xff]  ;;  %v336_v13 = vld [vmem:[%s1687_s18 + $0x140] sm:$0xff]  ;;  %v338_v14 = vld [vmem:[%s1687_s18 + $0x150] sm:$0xff] }
  0x85   : > { %1269 = vmatprep.subr.bf16.mxu1 %v1523_v4  ;;  %v341_v15 = vld [vmem:[%s1687_s18 + $0x168] sm:$0xff]  ;;  %v343_v16 = vld [vmem:[%s1687_s18 + $0x178] sm:$0xff]  ;;  %v344_v21 = vld [vmem:[%s1687_s18 + $0x180] sm:$0xff] }
  0x86   : > { %v345_v19 = vld [vmem:[%s1687_s18 + $0x188] sm:$0xff]  ;;  %v347_v20 = vld [vmem:[%s1687_s18 + $0x198] sm:$0xff]  ;;  %v346_v22 = vld [vmem:[%s1687_s18 + $0x190] sm:$0xff] }
  0x87   : > { %1223 = vmatpush1.bf16.msra.mxu0 %v1222_v56  ;;  %v316_v56 = vld [vmem:[%s1687_s18 + $0xa0] sm:$0xff]  ;;  %v350_v26 = vld [vmem:[%s1687_s18 + $0x1b0] sm:$0xff]  ;;  %v353_v27 = vld [vmem:[%s1687_s18 + $0x1c8] sm:$0xff] }
  0x88   : > { %1271 = vmatpush1.bf16.msra.mxu1 %v1270_v57  ;;  %1224 = vmatprep.subr.bf16.mxu0 %v1523_v4  ;;  %v318_v57 = vld [vmem:[%s1687_s18 + $0xb0] sm:$0xff]  ;;  %v348_v25 = vld [vmem:[%s1687_s18 + $0x1a0] sm:$0xff]  ;;  %v355_v28 = vld [vmem:[%s1687_s18 + $0x1d8] sm:$0xff] }
  0x89   : > { %1272 = vmatprep.subr.bf16.mxu1 %v1523_v4  ;;  %v357_v31 = vld [vmem:[%s1687_s18 + $0x1e8] sm:$0xff]  ;;  %v359_v32 = vld [vmem:[%s1687_s18 + $0x1f8] sm:$0xff]  ;;  %v356_v33 = vld [vmem:[%s1687_s18 + $0x1e0] sm:$0xff] }
  0x8a   : > { %v358_v34 = vld [vmem:[%s1687_s18 + $0x1f0] sm:$0xff] }
  0x8b   : > { %1226 = vmatpush1.bf16.msra.mxu0 %v1225_v62  ;;  %v325_v62 = vld [vmem:[%s1687_s18 + $0xe8] sm:$0xff] }
  0x8c   : > { %1274 = vmatpush1.bf16.msra.mxu1 %v1273_v63  ;;  %1227 = vmatprep.subr.bf16.mxu0 %v1523_v4  ;;  %v327_v63 = vld [vmem:[%s1687_s18 + $0xf8] sm:$0xff] }
  0x8d   : > { %1275 = vmatprep.subr.bf16.mxu1 %v1523_v4 }
  0x8f   : > { %1229 = vmatpush1.bf16.msra.mxu0 %v1228_v5  ;;  %v328_v5 = vld [vmem:[%s1687_s18 + $0x100] sm:$0xff] }
  0x90   : > { %1277 = vmatpush1.bf16.msra.mxu1 %v1276_v6  ;;  %1230 = vmatprep.subr.bf16.mxu0 %v1523_v4  ;;  %v330_v6 = vld [vmem:[%s1687_s18 + $0x110] sm:$0xff] }
  0x91   : > { %1278 = vmatprep.subr.bf16.mxu1 %v1523_v4 }
  0x93   : > { %1232 = vmatpush1.bf16.msra.mxu0 %v1231_v11  ;;  %v337_v11 = vld [vmem:[%s1687_s18 + $0x148] sm:$0xff] }
  0x94   : > { %1280 = vmatpush1.bf16.msra.mxu1 %v1279_v12  ;;  %1233 = vmatprep.subr.bf16.mxu0 %v1523_v4  ;;  %v339_v12 = vld [vmem:[%s1687_s18 + $0x158] sm:$0xff] }
  0x95   : > { %1281 = vmatprep.subr.bf16.mxu1 %v1523_v4 }
  0x97   : > { %1235 = vmatpush1.bf16.msra.mxu0 %v1234_v17  ;;  %v340_v17 = vld [vmem:[%s1687_s18 + $0x160] sm:$0xff] }
  0x98   : > { %1283 = vmatpush1.bf16.msra.mxu1 %v1282_v18  ;;  %1236 = vmatprep.subr.bf16.mxu0 %v1523_v4  ;;  %v342_v18 = vld [vmem:[%s1687_s18 + $0x170] sm:$0xff] }
  0x99   : > { %1284 = vmatprep.subr.bf16.mxu1 %v1523_v4 }
  0x9b   : > { %1238 = vmatpush1.bf16.msra.mxu0 %v1237_v23  ;;  %v349_v23 = vld [vmem:[%s1687_s18 + $0x1a8] sm:$0xff] }
  0x9c   : > { %1286 = vmatpush1.bf16.msra.mxu1 %v1285_v24  ;;  %1239 = vmatprep.subr.bf16.mxu0 %v1523_v4  ;;  %v351_v24 = vld [vmem:[%s1687_s18 + $0x1b8] sm:$0xff] }
  0x9d   : > { %1287 = vmatprep.subr.bf16.mxu1 %v1523_v4 }
  0x9f   : > { %1241 = vmatpush1.bf16.msra.mxu0 %v1240_v29  ;;  %v352_v29 = vld [vmem:[%s1687_s18 + $0x1c0] sm:$0xff] }
  0xa0   : > { %1289 = vmatpush1.bf16.msra.mxu1 %v1288_v30  ;;  %1242 = vmatprep.subr.bf16.mxu0 %v1523_v4  ;;  %v354_v30 = vld [vmem:[%s1687_s18 + $0x1d0] sm:$0xff] }
  0xa1   : > { %1290 = vmatprep.subr.bf16.mxu1 %v1523_v4  ;;  %v307_v4 = vld [vmem:[%s1687_s18 + $0x58] sm:$0xff] }
  0xa3   : > { %1244 = vmatpush1.bf16.msra.mxu0 %v1243_v35  ;;  %v361_v35 = vld [vmem:[%s1687_s18 + $0x208] sm:$0xff] }
  0xa4   : > { %1292 = vmatpush1.bf16.msra.mxu1 %v1291_v36  ;;  %v363_v36 = vld [vmem:[%s1687_s18 + $0x218] sm:$0xff] }
  0xa6   : > { %553 = vmatmul.mubr.f32.vlgmr.msra.gmra.mrb[0].mxu0 %v296_v37  ;;  %v360_v37 = vld [vmem:[%s1687_s18 + $0x200] sm:$0xff] }
  0xa7   : > { %778 = vmatmul.mubr.f32.vlgmr.msra.gmra.mrb[0].mxu1 %v298_v38  ;;  %557 = vmatprep.mubr.f32.mxu0 %v301_v39  ;;  %v362_v38 = vld [vmem:[%s1687_s18 + $0x210] sm:$0xff]  ;;  %v365_v39 = vld [vmem:[%s1687_s18 + $0x228] sm:$0xff] }
  0xa8   : > { %782 = vmatprep.mubr.f32.mxu1 %v303_v40  ;;  %v367_v40 = vld [vmem:[%s1687_s18 + $0x238] sm:$0xff] }
  0xaa   : > { %558 = vmatmul.mubr.f32.gmra.mrb[2].mxu0 %v300_v41  ;;  %v364_v41 = vld [vmem:[%s1687_s18 + $0x220] sm:$0xff] }
  0xab   : > { %783 = vmatmul.mubr.f32.gmra.mrb[2].mxu1 %v302_v42  ;;  %562 = vmatprep.mubr.f32.mxu0 %v305_v43  ;;  %v366_v42 = vld [vmem:[%s1687_s18 + $0x230] sm:$0xff]  ;;  %v369_v43 = vld [vmem:[%s1687_s18 + $0x248] sm:$0xff] }
  0xac   : > { %787 = vmatprep.mubr.f32.mxu1 %v307_v4  ;;  %v371_v4 = vld [vmem:[%s1687_s18 + $0x258] sm:$0xff] }
  0xae   : > { %563 = vmatmul.mubr.f32.gmra.mrb[4].mxu0 %v304_v44  ;;  %v368_v44 = vld [vmem:[%s1687_s18 + $0x240] sm:$0xff] }
  0xaf   : > { %788 = vmatmul.mubr.f32.gmra.mrb[4].mxu1 %v306_v45  ;;  %567 = vmatprep.mubr.f32.mxu0 %v309_v46  ;;  %v370_v45 = vld [vmem:[%s1687_s18 + $0x250] sm:$0xff]  ;;  %v373_v46 = vld [vmem:[%s1687_s18 + $0x268] sm:$0xff] }
  0xb0   : > { %792 = vmatprep.mubr.f32.mxu1 %v311_v47  ;;  %v375_v47 = vld [vmem:[%s1687_s18 + $0x278] sm:$0xff] }
  0xb2   : > { %568 = vmatmul.mubr.f32.gmra.mrb[6].mxu0 %v308_v48  ;;  %v372_v48 = vld [vmem:[%s1687_s18 + $0x260] sm:$0xff] }
  0xb3   : > { %793 = vmatmul.mubr.f32.gmra.mrb[6].mxu1 %v310_v49  ;;  %572 = vmatprep.mubr.f32.mxu0 %v313_v50  ;;  %v374_v49 = vld [vmem:[%s1687_s18 + $0x270] sm:$0xff]  ;;  %v377_v50 = vld [vmem:[%s1687_s18 + $0x288] sm:$0xff] }
  0xb4   : > { %797 = vmatprep.mubr.f32.mxu1 %v315_v51  ;;  %v379_v51 = vld [vmem:[%s1687_s18 + $0x298] sm:$0xff] }
  0xb6   : > { %573 = vmatmul.mubr.f32.gmra.mrb[8].mxu0 %v312_v52  ;;  %v376_v52 = vld [vmem:[%s1687_s18 + $0x280] sm:$0xff] }
  0xb7   : > { %798 = vmatmul.mubr.f32.gmra.mrb[8].mxu1 %v314_v53  ;;  %577 = vmatprep.mubr.f32.mxu0 %v317_v54  ;;  %v378_v53 = vld [vmem:[%s1687_s18 + $0x290] sm:$0xff]  ;;  %v381_v54 = vld [vmem:[%s1687_s18 + $0x2a8] sm:$0xff] }
  0xb8   : > { %802 = vmatprep.mubr.f32.mxu1 %v319_v55  ;;  %v383_v55 = vld [vmem:[%s1687_s18 + $0x2b8] sm:$0xff] }
  0xba   : > { %578 = vmatmul.mubr.f32.gmra.mrb[10].mxu0 %v316_v56  ;;  %v380_v56 = vld [vmem:[%s1687_s18 + $0x2a0] sm:$0xff] }
  0xbb   : > { %803 = vmatmul.mubr.f32.gmra.mrb[10].mxu1 %v318_v57  ;;  %582 = vmatprep.mubr.f32.mxu0 %v321_v58  ;;  %v382_v57 = vld [vmem:[%s1687_s18 + $0x2b0] sm:$0xff]  ;;  %v385_v58 = vld [vmem:[%s1687_s18 + $0x2c8] sm:$0xff] }
  0xbc   : > { %807 = vmatprep.mubr.f32.mxu1 %v323_v59  ;;  %v387_v59 = vld [vmem:[%s1687_s18 + $0x2d8] sm:$0xff] }
  0xbe   : > { %583 = vmatmul.mubr.f32.gmra.mrb[12].mxu0 %v320_v60  ;;  %v384_v60 = vld [vmem:[%s1687_s18 + $0x2c0] sm:$0xff] }
  0xbf   : > { %808 = vmatmul.mubr.f32.gmra.mrb[12].mxu1 %v322_v61  ;;  %587 = vmatprep.mubr.f32.mxu0 %v325_v62  ;;  %v386_v61 = vld [vmem:[%s1687_s18 + $0x2d0] sm:$0xff]  ;;  %v389_v62 = vld [vmem:[%s1687_s18 + $0x2e8] sm:$0xff] }
  0xc0   : > { %812 = vmatprep.mubr.f32.mxu1 %v327_v63  ;;  %v391_v63 = vld [vmem:[%s1687_s18 + $0x2f8] sm:$0xff] }
  0xc2   : > { %588 = vmatmul.mubr.f32.gmra.mrb[14].mxu0 %v324_v0  ;;  %v388_v0 = vld [vmem:[%s1687_s18 + $0x2e0] sm:$0xff] }
  0xc3   : > { %813 = vmatmul.mubr.f32.gmra.mrb[14].mxu1 %v326_v1  ;;  %592 = vmatprep.mubr.f32.mxu0 %v329_v2  ;;  %v390_v1 = vld [vmem:[%s1687_s18 + $0x2f0] sm:$0xff]  ;;  %v393_v2 = vld [vmem:[%s1687_s18 + $0x308] sm:$0xff] }
  0xc4   : > { %817 = vmatprep.mubr.f32.mxu1 %v331_v3  ;;  %v395_v3 = vld [vmem:[%s1687_s18 + $0x318] sm:$0xff] }
  0xc6   : > { %593 = vmatmul.mubr.f32.gmra.mrb[16].mxu0 %v328_v5  ;;  %v392_v5 = vld [vmem:[%s1687_s18 + $0x300] sm:$0xff] }
  0xc7   : > { %818 = vmatmul.mubr.f32.gmra.mrb[16].mxu1 %v330_v6  ;;  %597 = vmatprep.mubr.f32.mxu0 %v333_v7  ;;  %v394_v6 = vld [vmem:[%s1687_s18 + $0x310] sm:$0xff]  ;;  %v397_v7 = vld [vmem:[%s1687_s18 + $0x328] sm:$0xff] }
  0xc8   : > { %822 = vmatprep.mubr.f32.mxu1 %v335_v8  ;;  %v399_v8 = vld [vmem:[%s1687_s18 + $0x338] sm:$0xff] }
  0xca   : > { %598 = vmatmul.mubr.f32.gmra.mrb[18].mxu0 %v332_v9  ;;  %v396_v9 = vld [vmem:[%s1687_s18 + $0x320] sm:$0xff] }
  0xcb   : > { %823 = vmatmul.mubr.f32.gmra.mrb[18].mxu1 %v334_v10  ;;  %602 = vmatprep.mubr.f32.mxu0 %v337_v11  ;;  %v398_v10 = vld [vmem:[%s1687_s18 + $0x330] sm:$0xff]  ;;  %v401_v11 = vld [vmem:[%s1687_s18 + $0x348] sm:$0xff] }
  0xcc   : > { %827 = vmatprep.mubr.f32.mxu1 %v339_v12  ;;  %v403_v12 = vld [vmem:[%s1687_s18 + $0x358] sm:$0xff] }
  0xce   : > { %603 = vmatmul.mubr.f32.gmra.mrb[20].mxu0 %v336_v13  ;;  %v400_v13 = vld [vmem:[%s1687_s18 + $0x340] sm:$0xff] }
  0xcf   : > { %828 = vmatmul.mubr.f32.gmra.mrb[20].mxu1 %v338_v14  ;;  %607 = vmatprep.mubr.f32.mxu0 %v341_v15  ;;  %v402_v14 = vld [vmem:[%s1687_s18 + $0x350] sm:$0xff]  ;;  %v405_v15 = vld [vmem:[%s1687_s18 + $0x368] sm:$0xff] }
  0xd0   : > { %832 = vmatprep.mubr.f32.mxu1 %v343_v16  ;;  %v407_v16 = vld [vmem:[%s1687_s18 + $0x378] sm:$0xff] }
  0xd2   : > { %608 = vmatmul.mubr.f32.gmra.mrb[22].mxu0 %v340_v17  ;;  %v404_v17 = vld [vmem:[%s1687_s18 + $0x360] sm:$0xff] }
  0xd3   : > { %833 = vmatmul.mubr.f32.gmra.mrb[22].mxu1 %v342_v18  ;;  %612 = vmatprep.mubr.f32.mxu0 %v345_v19  ;;  %v406_v18 = vld [vmem:[%s1687_s18 + $0x370] sm:$0xff]  ;;  %v409_v19 = vld [vmem:[%s1687_s18 + $0x388] sm:$0xff] }
  0xd4   : > { %837 = vmatprep.mubr.f32.mxu1 %v347_v20  ;;  %v411_v20 = vld [vmem:[%s1687_s18 + $0x398] sm:$0xff] }
  0xd6   : > { %613 = vmatmul.mubr.f32.gmra.mrb[24].mxu0 %v344_v21  ;;  %v408_v21 = vld [vmem:[%s1687_s18 + $0x380] sm:$0xff] }
  0xd7   : > { %838 = vmatmul.mubr.f32.gmra.mrb[24].mxu1 %v346_v22  ;;  %617 = vmatprep.mubr.f32.mxu0 %v349_v23  ;;  %v410_v22 = vld [vmem:[%s1687_s18 + $0x390] sm:$0xff]  ;;  %v413_v23 = vld [vmem:[%s1687_s18 + $0x3a8] sm:$0xff] }
  0xd8   : > { %842 = vmatprep.mubr.f32.mxu1 %v351_v24  ;;  %v415_v24 = vld [vmem:[%s1687_s18 + $0x3b8] sm:$0xff] }
  0xda   : > { %618 = vmatmul.mubr.f32.gmra.mrb[26].mxu0 %v348_v25  ;;  %v412_v25 = vld [vmem:[%s1687_s18 + $0x3a0] sm:$0xff] }
  0xdb   : > { %843 = vmatmul.mubr.f32.gmra.mrb[26].mxu1 %v350_v26  ;;  %622 = vmatprep.mubr.f32.mxu0 %v353_v27  ;;  %v414_v26 = vld [vmem:[%s1687_s18 + $0x3b0] sm:$0xff]  ;;  %v417_v27 = vld [vmem:[%s1687_s18 + $0x3c8] sm:$0xff] }
  0xdc   : > { %847 = vmatprep.mubr.f32.mxu1 %v355_v28  ;;  %v419_v28 = vld [vmem:[%s1687_s18 + $0x3d8] sm:$0xff] }
  0xde   : > { %623 = vmatmul.mubr.f32.gmra.mrb[28].mxu0 %v352_v29  ;;  %v416_v29 = vld [vmem:[%s1687_s18 + $0x3c0] sm:$0xff] }
  0xdf   : > { %848 = vmatmul.mubr.f32.gmra.mrb[28].mxu1 %v354_v30  ;;  %627 = vmatprep.mubr.f32.mxu0 %v357_v31  ;;  %v418_v30 = vld [vmem:[%s1687_s18 + $0x3d0] sm:$0xff]  ;;  %v421_v31 = vld [vmem:[%s1687_s18 + $0x3e8] sm:$0xff] }
  0xe0   : > { %852 = vmatprep.mubr.f32.mxu1 %v359_v32  ;;  %v423_v32 = vld [vmem:[%s1687_s18 + $0x3f8] sm:$0xff] }
  0xe2   : > { %628 = vmatmul.mubr.f32.gmra.mrb[30].mxu0 %v356_v33  ;;  %v420_v33 = vld [vmem:[%s1687_s18 + $0x3e0] sm:$0xff] }
  0xe3   : > { %853 = vmatmul.mubr.f32.gmra.mrb[30].mxu1 %v358_v34  ;;  %632 = vmatprep.mubr.f32.mxu0 %v361_v35  ;;  %v422_v34 = vld [vmem:[%s1687_s18 + $0x3f0] sm:$0xff] }
  0xe4   : > { %857 = vmatprep.mubr.f32.mxu1 %v363_v36  ;;  %v264_v36 = vld [vmem:[#allocation2] sm:$0xff] }
  0xe6   : > { %633 = vmatmul.mubr.f32.gmra.mrb[32].mxu0 %v360_v37 }
  0xe7   : > { %858 = vmatmul.mubr.f32.gmra.mrb[32].mxu1 %v362_v38  ;;  %637 = vmatprep.mubr.f32.mxu0 %v365_v39 }
  0xe8   : > { %862 = vmatprep.mubr.f32.mxu1 %v367_v40 }
  0xea   : > { %638 = vmatmul.mubr.f32.gmra.mrb[34].mxu0 %v364_v41 }
  0xeb   : > { %863 = vmatmul.mubr.f32.gmra.mrb[34].mxu1 %v366_v42  ;;  %642 = vmatprep.mubr.f32.mxu0 %v369_v43  ;;  %v265_v43 = vld [vmem:[#allocation2 + $0x8] sm:$0xff] }
  0xec   : > { %867 = vmatprep.mubr.f32.mxu1 %v371_v4 }
  0xee   : > { %643 = vmatmul.mubr.f32.gmra.mrb[36].mxu0 %v368_v44 }
  0xef   : > { %868 = vmatmul.mubr.f32.gmra.mrb[36].mxu1 %v370_v45  ;;  %647 = vmatprep.mubr.f32.mxu0 %v373_v46 }
  0xf0   : > { %872 = vmatprep.mubr.f32.mxu1 %v375_v47 }
  0xf2   : > { %648 = vmatmul.mubr.f32.gmra.mrb[38].mxu0 %v372_v48 }
  0xf3   : > { %873 = vmatmul.mubr.f32.gmra.mrb[38].mxu1 %v374_v49  ;;  %652 = vmatprep.mubr.f32.mxu0 %v377_v50  ;;  %v266_v49 = vld [vmem:[#allocation2 + $0x10] sm:$0xff] }
  0xf4   : > { %877 = vmatprep.mubr.f32.mxu1 %v379_v51 }
  0xf6   : > { %653 = vmatmul.mubr.f32.gmra.mrb[40].mxu0 %v376_v52 }
  0xf7   : > { %878 = vmatmul.mubr.f32.gmra.mrb[40].mxu1 %v378_v53  ;;  %657 = vmatprep.mubr.f32.mxu0 %v381_v54 }
  0xf8   : > { %882 = vmatprep.mubr.f32.mxu1 %v383_v55 }
  0xfa   : > { %658 = vmatmul.mubr.f32.gmra.mrb[42].mxu0 %v380_v56  ;;  %v267_v56 = vld [vmem:[#allocation2 + $0x18] sm:$0xff] }
  0xfb   : > { %883 = vmatmul.mubr.f32.gmra.mrb[42].mxu1 %v382_v57  ;;  %662 = vmatprep.mubr.f32.mxu0 %v385_v58 }
  0xfc   : > { %887 = vmatprep.mubr.f32.mxu1 %v387_v59 }
  0xfe   : > { %663 = vmatmul.mubr.f32.gmra.mrb[44].mxu0 %v384_v60 }
  0xff   : > { %888 = vmatmul.mubr.f32.gmra.mrb[44].mxu1 %v386_v61  ;;  %667 = vmatprep.mubr.f32.mxu0 %v389_v62 }
 0x100   : > { %892 = vmatprep.mubr.f32.mxu1 %v391_v63  ;;  %v268_v63 = vld [vmem:[#allocation2 + $0x20] sm:$0xff] }
 0x102   : > { %668 = vmatmul.mubr.f32.gmra.mrb[46].mxu0 %v388_v0 }
 0x103   : > { %893 = vmatmul.mubr.f32.gmra.mrb[46].mxu1 %v390_v1  ;;  %672 = vmatprep.mubr.f32.mxu0 %v393_v2 }
 0x104   : > { %897 = vmatprep.mubr.f32.mxu1 %v395_v3 }
 0x106   : > { %673 = vmatmul.mubr.f32.gmra.mrb[48].mxu0 %v392_v5 }
 0x107   : > { %898 = vmatmul.mubr.f32.gmra.mrb[48].mxu1 %v394_v6  ;;  %677 = vmatprep.mubr.f32.mxu0 %v397_v7  ;;  %v269_v7 = vld [vmem:[#allocation2 + $0x28] sm:$0xff] }
 0x108   : > { %902 = vmatprep.mubr.f32.mxu1 %v399_v8 }
 0x10a   : > { %678 = vmatmul.mubr.f32.gmra.mrb[50].mxu0 %v396_v9 }
 0x10b   : > { %903 = vmatmul.mubr.f32.gmra.mrb[50].mxu1 %v398_v10  ;;  %682 = vmatprep.mubr.f32.mxu0 %v401_v11 }
 0x10c   : > { %907 = vmatprep.mubr.f32.mxu1 %v403_v12 }
 0x10e   : > { %683 = vmatmul.mubr.f32.gmra.mrb[52].mxu0 %v400_v13 }
 0x10f   : > { %908 = vmatmul.mubr.f32.gmra.mrb[52].mxu1 %v402_v14  ;;  %687 = vmatprep.mubr.f32.mxu0 %v405_v15  ;;  %v270_v14 = vld [vmem:[#allocation2 + $0x30] sm:$0xff] }
 0x110   : > { %912 = vmatprep.mubr.f32.mxu1 %v407_v16 }
 0x112   : > { %688 = vmatmul.mubr.f32.gmra.mrb[54].mxu0 %v404_v17 }
 0x113   : > { %913 = vmatmul.mubr.f32.gmra.mrb[54].mxu1 %v406_v18  ;;  %692 = vmatprep.mubr.f32.mxu0 %v409_v19 }
 0x114   : > { %917 = vmatprep.mubr.f32.mxu1 %v411_v20 }
 0x116   : > { %693 = vmatmul.mubr.f32.gmra.mrb[56].mxu0 %v408_v21  ;;  %v271_v21 = vld [vmem:[#allocation2 + $0x38] sm:$0xff] }
 0x117   : > { %918 = vmatmul.mubr.f32.gmra.mrb[56].mxu1 %v410_v22  ;;  %697 = vmatprep.mubr.f32.mxu0 %v413_v23 }
 0x118   : > { %922 = vmatprep.mubr.f32.mxu1 %v415_v24 }
 0x11a   : > { %698 = vmatmul.mubr.f32.gmra.mrb[58].mxu0 %v412_v25 }
 0x11b   : > { %923 = vmatmul.mubr.f32.gmra.mrb[58].mxu1 %v414_v26  ;;  %702 = vmatprep.mubr.f32.mxu0 %v417_v27 }
 0x11c   : > { %927 = vmatprep.mubr.f32.mxu1 %v419_v28  ;;  %v272_v28 = vld [vmem:[#allocation2 + $0x40] sm:$0xff] }
 0x11e   : > { %703 = vmatmul.mubr.f32.gmra.mrb[60].mxu0 %v416_v29 }
 0x11f   : > { %928 = vmatmul.mubr.f32.gmra.mrb[60].mxu1 %v418_v30  ;;  %707 = vmatprep.mubr.f32.mxu0 %v421_v31 }
 0x120   : > { %932 = vmatprep.mubr.f32.mxu1 %v423_v32 }
 0x122   : > { %708 = vmatmul.mubr.f32.gmra.mrb[62].mxu0 %v420_v33 }
 0x123   : > { %933 = vmatmul.mubr.f32.gmra.mrb[62].mxu1 %v422_v34 }
 0x179   : > { %v554_v35 = vpop.f32.mrb[0].mxu0 }
 0x17a   : > { %v779_v37 = vpop.f32.mrb[0].mxu1  ;;  %v556_v38 = vpop.f32.mrb[1].mxu0 }
 0x17b   : > { %v780_v39 = vadd.f32 %v779_v37, %v554_v35  ;;  %v781_v40 = vpop.f32.mrb[1].mxu1  ;;  %v273_v35 = vld [vmem:[#allocation2 + $0x48] sm:$0xff] }
 0x17d   : > { %v938_v41 = vadd.f32 %v780_v39, %v264_v36  ;;  %v559_v42 = vpop.f32.mrb[2].mxu0 }
 0x17e   : > { %v784_v4 = vpop.f32.mrb[2].mxu1  ;;  %v561_v44 = vpop.f32.mrb[3].mxu0 }
 0x17f   : > { %970 = vst [vmem:[#allocation2] sm:$0xff] %v938_v41  ;;  %v785_v45 = vadd.f32 %v784_v4, %v559_v42  ;;  %v786_v46 = vpop.f32.mrb[3].mxu1  ;;  %v274_v42 = vld [vmem:[#allocation2 + $0x50] sm:$0xff] }
 0x181   : > { %v939_v47 = vadd.f32 %v785_v45, %v265_v43  ;;  %v564_v48 = vpop.f32.mrb[4].mxu0 }
 0x182   : > { %v789_v50 = vpop.f32.mrb[4].mxu1  ;;  %v566_v51 = vpop.f32.mrb[5].mxu0 }
 0x183   : > { %971 = vst [vmem:[#allocation2 + $0x8] sm:$0xff] %v939_v47  ;;  %v790_v52 = vadd.f32 %v789_v50, %v564_v48  ;;  %v791_v53 = vpop.f32.mrb[5].mxu1  ;;  %v275_v48 = vld [vmem:[#allocation2 + $0x58] sm:$0xff] }
 0x185   : > { %v940_v54 = vadd.f32 %v790_v52, %v266_v49  ;;  %v569_v55 = vpop.f32.mrb[6].mxu0 }
 0x186   : > { %v794_v57 = vpop.f32.mrb[6].mxu1  ;;  %v571_v58 = vpop.f32.mrb[7].mxu0 }
 0x187   : > { %972 = vst [vmem:[#allocation2 + $0x10] sm:$0xff] %v940_v54  ;;  %v795_v59 = vadd.f32 %v794_v57, %v569_v55  ;;  %v796_v60 = vpop.f32.mrb[7].mxu1  ;;  %v276_v55 = vld [vmem:[#allocation2 + $0x60] sm:$0xff] }
 0x189   : > { %v941_v61 = vadd.f32 %v795_v59, %v267_v56  ;;  %v574_v62 = vpop.f32.mrb[8].mxu0 }
 0x18a   : > { %v799_v0 = vpop.f32.mrb[8].mxu1  ;;  %v576_v1 = vpop.f32.mrb[9].mxu0 }
 0x18b   : > { %973 = vst [vmem:[#allocation2 + $0x18] sm:$0xff] %v941_v61  ;;  %v800_v2 = vadd.f32 %v799_v0, %v574_v62  ;;  %v801_v3 = vpop.f32.mrb[9].mxu1  ;;  %v277_v62 = vld [vmem:[#allocation2 + $0x68] sm:$0xff] }
 0x18d   : > { %v942_v5 = vadd.f32 %v800_v2, %v268_v63  ;;  %v579_v6 = vpop.f32.mrb[10].mxu0 }
 0x18e   : > { %v804_v8 = vpop.f32.mrb[10].mxu1  ;;  %v581_v9 = vpop.f32.mrb[11].mxu0 }
 0x18f   : > { %974 = vst [vmem:[#allocation2 + $0x20] sm:$0xff] %v942_v5  ;;  %v805_v10 = vadd.f32 %v804_v8, %v579_v6  ;;  %v806_v11 = vpop.f32.mrb[11].mxu1  ;;  %v278_v6 = vld [vmem:[#allocation2 + $0x70] sm:$0xff] }
 0x191   : > { %v943_v12 = vadd.f32 %v805_v10, %v269_v7  ;;  %v584_v13 = vpop.f32.mrb[12].mxu0 }
 0x192   : > { %v809_v15 = vpop.f32.mrb[12].mxu1  ;;  %v586_v16 = vpop.f32.mrb[13].mxu0 }
 0x193   : > { %975 = vst [vmem:[#allocation2 + $0x28] sm:$0xff] %v943_v12  ;;  %v810_v17 = vadd.f32 %v809_v15, %v584_v13  ;;  %v811_v18 = vpop.f32.mrb[13].mxu1  ;;  %v279_v13 = vld [vmem:[#allocation2 + $0x78] sm:$0xff] }
 0x195   : > { %v944_v19 = vadd.f32 %v810_v17, %v270_v14  ;;  %v589_v20 = vpop.f32.mrb[14].mxu0 }
 0x196   : > { %v814_v22 = vpop.f32.mrb[14].mxu1  ;;  %v591_v23 = vpop.f32.mrb[15].mxu0 }
 0x197   : > { %976 = vst [vmem:[#allocation2 + $0x30] sm:$0xff] %v944_v19  ;;  %v815_v24 = vadd.f32 %v814_v22, %v589_v20  ;;  %v816_v25 = vpop.f32.mrb[15].mxu1  ;;  %v280_v20 = vld [vmem:[#allocation2 + $0x80] sm:$0xff] }
 0x199   : > { %v945_v26 = vadd.f32 %v815_v24, %v271_v21  ;;  %v594_v27 = vpop.f32.mrb[16].mxu0 }
 0x19a   : > { %v819_v29 = vpop.f32.mrb[16].mxu1  ;;  %v596_v30 = vpop.f32.mrb[17].mxu0 }
 0x19b   : > { %977 = vst [vmem:[#allocation2 + $0x38] sm:$0xff] %v945_v26  ;;  %v820_v31 = vadd.f32 %v819_v29, %v594_v27  ;;  %v821_v32 = vpop.f32.mrb[17].mxu1  ;;  %v281_v27 = vld [vmem:[#allocation2 + $0x88] sm:$0xff] }
 0x19d   : > { %v946_v33 = vadd.f32 %v820_v31, %v272_v28  ;;  %v599_v34 = vpop.f32.mrb[18].mxu0 }
 0x19e   : > { %v824_v36 = vpop.f32.mrb[18].mxu1  ;;  %v601_v37 = vpop.f32.mrb[19].mxu0 }
 0x19f   : > { %978 = vst [vmem:[#allocation2 + $0x40] sm:$0xff] %v946_v33  ;;  %v825_v38 = vadd.f32 %v824_v36, %v599_v34  ;;  %v826_v39 = vpop.f32.mrb[19].mxu1  ;;  %v282_v34 = vld [vmem:[#allocation2 + $0x90] sm:$0xff] }
 0x1a1   : > { %v947_v40 = vadd.f32 %v825_v38, %v273_v35  ;;  %v604_v41 = vpop.f32.mrb[20].mxu0 }
 0x1a2   : > { %v829_v43 = vpop.f32.mrb[20].mxu1  ;;  %v606_v4 = vpop.f32.mrb[21].mxu0 }
 0x1a3   : > { %979 = vst [vmem:[#allocation2 + $0x48] sm:$0xff] %v947_v40  ;;  %v830_v44 = vadd.f32 %v829_v43, %v604_v41  ;;  %v831_v45 = vpop.f32.mrb[21].mxu1  ;;  %v283_v41 = vld [vmem:[#allocation2 + $0x98] sm:$0xff] }
 0x1a5   : > { %v948_v46 = vadd.f32 %v830_v44, %v274_v42  ;;  %v609_v47 = vpop.f32.mrb[22].mxu0 }
 0x1a6   : > { %v834_v49 = vpop.f32.mrb[22].mxu1  ;;  %v611_v50 = vpop.f32.mrb[23].mxu0 }
 0x1a7   : > { %980 = vst [vmem:[#allocation2 + $0x50] sm:$0xff] %v948_v46  ;;  %v835_v51 = vadd.f32 %v834_v49, %v609_v47  ;;  %v836_v52 = vpop.f32.mrb[23].mxu1  ;;  %v284_v47 = vld [vmem:[#allocation2 + $0xa0] sm:$0xff] }
 0x1a9   : > { %v949_v53 = vadd.f32 %v835_v51, %v275_v48  ;;  %v614_v54 = vpop.f32.mrb[24].mxu0 }
 0x1aa   : > { %v839_v56 = vpop.f32.mrb[24].mxu1  ;;  %v616_v57 = vpop.f32.mrb[25].mxu0 }
 0x1ab   : > { %981 = vst [vmem:[#allocation2 + $0x58] sm:$0xff] %v949_v53  ;;  %v840_v58 = vadd.f32 %v839_v56, %v614_v54  ;;  %v841_v59 = vpop.f32.mrb[25].mxu1  ;;  %v285_v54 = vld [vmem:[#allocation2 + $0xa8] sm:$0xff] }
 0x1ad   : > { %v950_v60 = vadd.f32 %v840_v58, %v276_v55  ;;  %v619_v61 = vpop.f32.mrb[26].mxu0 }
 0x1ae   : > { %v844_v63 = vpop.f32.mrb[26].mxu1  ;;  %v621_v0 = vpop.f32.mrb[27].mxu0 }
 0x1af   : > { %982 = vst [vmem:[#allocation2 + $0x60] sm:$0xff] %v950_v60  ;;  %v845_v1 = vadd.f32 %v844_v63, %v619_v61  ;;  %v846_v2 = vpop.f32.mrb[27].mxu1  ;;  %v286_v61 = vld [vmem:[#allocation2 + $0xb0] sm:$0xff] }
 0x1b1   : > { %v951_v3 = vadd.f32 %v845_v1, %v277_v62  ;;  %v624_v5 = vpop.f32.mrb[28].mxu0 }
 0x1b2   : > { %v849_v7 = vpop.f32.mrb[28].mxu1  ;;  %v626_v8 = vpop.f32.mrb[29].mxu0 }
 0x1b3   : > { %983 = vst [vmem:[#allocation2 + $0x68] sm:$0xff] %v951_v3  ;;  %v850_v9 = vadd.f32 %v849_v7, %v624_v5  ;;  %v851_v10 = vpop.f32.mrb[29].mxu1  ;;  %v287_v5 = vld [vmem:[#allocation2 + $0xb8] sm:$0xff] }
 0x1b5   : > { %v952_v11 = vadd.f32 %v850_v9, %v278_v6  ;;  %v629_v12 = vpop.f32.mrb[30].mxu0 }
 0x1b6   : > { %v854_v14 = vpop.f32.mrb[30].mxu1  ;;  %v631_v15 = vpop.f32.mrb[31].mxu0 }
 0x1b7   : > { %984 = vst [vmem:[#allocation2 + $0x70] sm:$0xff] %v952_v11  ;;  %v855_v16 = vadd.f32 %v854_v14, %v629_v12  ;;  %v856_v17 = vpop.f32.mrb[31].mxu1  ;;  %v288_v12 = vld [vmem:[#allocation2 + $0xc0] sm:$0xff] }
 0x1b9   : > { %v953_v18 = vadd.f32 %v855_v16, %v279_v13  ;;  %v634_v19 = vpop.f32.mrb[32].mxu0 }
 0x1ba   : > { %v859_v21 = vpop.f32.mrb[32].mxu1  ;;  %v636_v22 = vpop.f32.mrb[33].mxu0 }
 0x1bb   : > { %985 = vst [vmem:[#allocation2 + $0x78] sm:$0xff] %v953_v18  ;;  %v860_v23 = vadd.f32 %v859_v21, %v634_v19  ;;  %v861_v24 = vpop.f32.mrb[33].mxu1  ;;  %v289_v19 = vld [vmem:[#allocation2 + $0xc8] sm:$0xff] }
 0x1bd   : > { %v954_v25 = vadd.f32 %v860_v23, %v280_v20  ;;  %v639_v26 = vpop.f32.mrb[34].mxu0 }
 0x1be   : > { %v864_v28 = vpop.f32.mrb[34].mxu1  ;;  %v641_v29 = vpop.f32.mrb[35].mxu0 }
 0x1bf   : > { %986 = vst [vmem:[#allocation2 + $0x80] sm:$0xff] %v954_v25  ;;  %v865_v30 = vadd.f32 %v864_v28, %v639_v26  ;;  %v866_v31 = vpop.f32.mrb[35].mxu1  ;;  %v290_v26 = vld [vmem:[#allocation2 + $0xd0] sm:$0xff] }
 0x1c1   : > { %v955_v32 = vadd.f32 %v865_v30, %v281_v27  ;;  %v644_v33 = vpop.f32.mrb[36].mxu0 }
 0x1c2   : > { %v869_v35 = vpop.f32.mrb[36].mxu1  ;;  %v646_v36 = vpop.f32.mrb[37].mxu0 }
 0x1c3   : > { %987 = vst [vmem:[#allocation2 + $0x88] sm:$0xff] %v955_v32  ;;  %v870_v37 = vadd.f32 %v869_v35, %v644_v33  ;;  %v871_v38 = vpop.f32.mrb[37].mxu1  ;;  %v291_v33 = vld [vmem:[#allocation2 + $0xd8] sm:$0xff] }
 0x1c5   : > { %v956_v39 = vadd.f32 %v870_v37, %v282_v34  ;;  %v649_v40 = vpop.f32.mrb[38].mxu0 }
 0x1c6   : > { %v874_v42 = vpop.f32.mrb[38].mxu1  ;;  %v651_v43 = vpop.f32.mrb[39].mxu0 }
 0x1c7   : > { %988 = vst [vmem:[#allocation2 + $0x90] sm:$0xff] %v956_v39  ;;  %v875_v4 = vadd.f32 %v874_v42, %v649_v40  ;;  %v876_v44 = vpop.f32.mrb[39].mxu1  ;;  %v292_v40 = vld [vmem:[#allocation2 + $0xe0] sm:$0xff] }
 0x1c9   : > { %v957_v45 = vadd.f32 %v875_v4, %v283_v41  ;;  %v654_v46 = vpop.f32.mrb[40].mxu0 }
 0x1ca   : > { %v879_v48 = vpop.f32.mrb[40].mxu1  ;;  %v656_v49 = vpop.f32.mrb[41].mxu0 }
 0x1cb   : > { %989 = vst [vmem:[#allocation2 + $0x98] sm:$0xff] %v957_v45  ;;  %v880_v50 = vadd.f32 %v879_v48, %v654_v46  ;;  %v881_v51 = vpop.f32.mrb[41].mxu1  ;;  %v293_v46 = vld [vmem:[#allocation2 + $0xe8] sm:$0xff] }
 0x1cd   : > { %v958_v52 = vadd.f32 %v880_v50, %v284_v47  ;;  %v659_v53 = vpop.f32.mrb[42].mxu0 }
 0x1ce   : > { %v884_v55 = vpop.f32.mrb[42].mxu1  ;;  %v661_v56 = vpop.f32.mrb[43].mxu0 }
 0x1cf   : > { %990 = vst [vmem:[#allocation2 + $0xa0] sm:$0xff] %v958_v52  ;;  %v885_v57 = vadd.f32 %v884_v55, %v659_v53  ;;  %v886_v58 = vpop.f32.mrb[43].mxu1  ;;  %v294_v53 = vld [vmem:[#allocation2 + $0xf0] sm:$0xff] }
 0x1d1   : > { %v959_v59 = vadd.f32 %v885_v57, %v285_v54  ;;  %v664_v60 = vpop.f32.mrb[44].mxu0 }
 0x1d2   : > { %v889_v62 = vpop.f32.mrb[44].mxu1  ;;  %v666_v63 = vpop.f32.mrb[45].mxu0 }
 0x1d3   : > { %991 = vst [vmem:[#allocation2 + $0xa8] sm:$0xff] %v959_v59  ;;  %v890_v0 = vadd.f32 %v889_v62, %v664_v60  ;;  %v891_v1 = vpop.f32.mrb[45].mxu1  ;;  %v295_v60 = vld [vmem:[#allocation2 + $0xf8] sm:$0xff] }
 0x1d5   : > { %v960_v2 = vadd.f32 %v890_v0, %v286_v61  ;;  %v669_v3 = vpop.f32.mrb[46].mxu0 }
 0x1d6   : > { %v894_v6 = vpop.f32.mrb[46].mxu1  ;;  %v671_v7 = vpop.f32.mrb[47].mxu0 }
 0x1d7   : > { %992 = vst [vmem:[#allocation2 + $0xb0] sm:$0xff] %v960_v2  ;;  %v895_v8 = vadd.f32 %v894_v6, %v669_v3  ;;  %v896_v9 = vpop.f32.mrb[47].mxu1  ;;  %v1006_v2 = vld [vmem:[#allocation2] sm:$0xff] (!%p1190_p12)  ;;  %v1007_v3 = vld [vmem:[#allocation2 + $0x8] sm:$0xff] (!%p1190_p12)  ;;  %v1009_v6 = vld [vmem:[#allocation2 + $0x18] sm:$0xff] (!%p1190_p12) }
 0x1d8   : > { %1038 = vst [vmem:[#allocation8] sm:$0xff] (!%p1190_p12), %v1006_v2  ;;  %1039 = vst [vmem:[#allocation8 + $0x8] sm:$0xff] (!%p1190_p12), %v1007_v3  ;;  %v1010_v7 = vld [vmem:[#allocation2 + $0x20] sm:$0xff] (!%p1190_p12)  ;;  %v1012_v9 = vld [vmem:[#allocation2 + $0x30] sm:$0xff] (!%p1190_p12) }
 0x1d9   : > { %v961_v10 = vadd.f32 %v895_v8, %v287_v5  ;;  %v674_v11 = vpop.f32.mrb[48].mxu0  ;;  %v1008_v5 = vld [vmem:[#allocation2 + $0x10] sm:$0xff] (!%p1190_p12)  ;;  %v1011_v8 = vld [vmem:[#allocation2 + $0x28] sm:$0xff] (!%p1190_p12)  ;;  %1041 = vst [vmem:[#allocation8 + $0x18] sm:$0xff] (!%p1190_p12), %v1009_v6  ;;  %1042 = vst [vmem:[#allocation8 + $0x20] sm:$0xff] (!%p1190_p12), %v1010_v7 }
 0x1da   : > { %v899_v13 = vpop.f32.mrb[48].mxu1  ;;  %v676_v14 = vpop.f32.mrb[49].mxu0  ;;  %1040 = vst [vmem:[#allocation8 + $0x10] sm:$0xff] (!%p1190_p12), %v1008_v5  ;;  %1043 = vst [vmem:[#allocation8 + $0x28] sm:$0xff] (!%p1190_p12), %v1011_v8 }
 0x1db   : > { %993 = vst [vmem:[#allocation2 + $0xb8] sm:$0xff] %v961_v10  ;;  %v900_v15 = vadd.f32 %v899_v13, %v674_v11  ;;  %v901_v16 = vpop.f32.mrb[49].mxu1  ;;  %v1013_v10 = vld [vmem:[#allocation2 + $0x38] sm:$0xff] (!%p1190_p12)  ;;  %v1014_v11 = vld [vmem:[#allocation2 + $0x40] sm:$0xff] (!%p1190_p12)  ;;  %1044 = vst [vmem:[#allocation8 + $0x30] sm:$0xff] (!%p1190_p12), %v1012_v9 }
 0x1dc   : > { %1045 = vst [vmem:[#allocation8 + $0x38] sm:$0xff] (!%p1190_p12), %v1013_v10  ;;  %1046 = vst [vmem:[#allocation8 + $0x40] sm:$0xff] (!%p1190_p12), %v1014_v11  ;;  %v1016_v13 = vld [vmem:[#allocation2 + $0x50] sm:$0xff] (!%p1190_p12)  ;;  %v1017_v14 = vld [vmem:[#allocation2 + $0x58] sm:$0xff] (!%p1190_p12) }
 0x1dd   : > { %v962_v17 = vadd.f32 %v900_v15, %v288_v12  ;;  %v679_v18 = vpop.f32.mrb[50].mxu0  ;;  %v1015_v12 = vld [vmem:[#allocation2 + $0x48] sm:$0xff] (!%p1190_p12)  ;;  %1048 = vst [vmem:[#allocation8 + $0x50] sm:$0xff] (!%p1190_p12), %v1016_v13  ;;  %1049 = vst [vmem:[#allocation8 + $0x58] sm:$0xff] (!%p1190_p12), %v1017_v14  ;;  %v1018_v15 = vld [vmem:[#allocation2 + $0x60] sm:$0xff] (!%p1190_p12) }
 0x1de   : > { %v904_v20 = vpop.f32.mrb[50].mxu1  ;;  %v681_v21 = vpop.f32.mrb[51].mxu0  ;;  %1047 = vst [vmem:[#allocation8 + $0x48] sm:$0xff] (!%p1190_p12), %v1015_v12  ;;  %v1019_v16 = vld [vmem:[#allocation2 + $0x68] sm:$0xff] (!%p1190_p12)  ;;  %1050 = vst [vmem:[#allocation8 + $0x60] sm:$0xff] (!%p1190_p12), %v1018_v15 }
 0x1df   : > { %994 = vst [vmem:[#allocation2 + $0xc0] sm:$0xff] %v962_v17  ;;  %v905_v22 = vadd.f32 %v904_v20, %v679_v18  ;;  %v906_v23 = vpop.f32.mrb[51].mxu1  ;;  %v1020_v17 = vld [vmem:[#allocation2 + $0x70] sm:$0xff] (!%p1190_p12)  ;;  %1051 = vst [vmem:[#allocation8 + $0x68] sm:$0xff] (!%p1190_p12), %v1019_v16  ;;  %v1021_v18 = vld [vmem:[#allocation2 + $0x78] sm:$0xff] (!%p1190_p12) }
 0x1e0   : > { %1052 = vst [vmem:[#allocation8 + $0x70] sm:$0xff] (!%p1190_p12), %v1020_v17  ;;  %v1023_v20 = vld [vmem:[#allocation2 + $0x88] sm:$0xff] (!%p1190_p12)  ;;  %1053 = vst [vmem:[#allocation8 + $0x78] sm:$0xff] (!%p1190_p12), %v1021_v18  ;;  %v1024_v21 = vld [vmem:[#allocation2 + $0x90] sm:$0xff] (!%p1190_p12) }
 0x1e1   : > { %v963_v24 = vadd.f32 %v905_v22, %v289_v19  ;;  %v684_v25 = vpop.f32.mrb[52].mxu0  ;;  %v1022_v19 = vld [vmem:[#allocation2 + $0x80] sm:$0xff] (!%p1190_p12)  ;;  %1055 = vst [vmem:[#allocation8 + $0x88] sm:$0xff] (!%p1190_p12), %v1023_v20  ;;  %v1025_v22 = vld [vmem:[#allocation2 + $0x98] sm:$0xff] (!%p1190_p12)  ;;  %1056 = vst [vmem:[#allocation8 + $0x90] sm:$0xff] (!%p1190_p12), %v1024_v21 }
 0x1e2   : > { %v909_v27 = vpop.f32.mrb[52].mxu1  ;;  %v686_v28 = vpop.f32.mrb[53].mxu0  ;;  %1054 = vst [vmem:[#allocation8 + $0x80] sm:$0xff] (!%p1190_p12), %v1022_v19  ;;  %v1026_v23 = vld [vmem:[#allocation2 + $0xa0] sm:$0xff] (!%p1190_p12)  ;;  %1057 = vst [vmem:[#allocation8 + $0x98] sm:$0xff] (!%p1190_p12), %v1025_v22 }
 0x1e3   : > { %995 = vst [vmem:[#allocation2 + $0xc8] sm:$0xff] %v963_v24  ;;  %v910_v29 = vadd.f32 %v909_v27, %v684_v25  ;;  %v911_v30 = vpop.f32.mrb[53].mxu1  ;;  %1058 = vst [vmem:[#allocation8 + $0xa0] sm:$0xff] (!%p1190_p12), %v1026_v23  ;;  %v1027_v24 = vld [vmem:[#allocation2 + $0xa8] sm:$0xff] (!%p1190_p12)  ;;  %v1028_v25 = vld [vmem:[#allocation2 + $0xb0] sm:$0xff] (!%p1190_p12) }
 0x1e4   : > { %1059 = vst [vmem:[#allocation8 + $0xa8] sm:$0xff] (!%p1190_p12), %v1027_v24  ;;  %1060 = vst [vmem:[#allocation8 + $0xb0] sm:$0xff] (!%p1190_p12), %v1028_v25 }
 0x1e5   : > { %v964_v31 = vadd.f32 %v910_v29, %v290_v26  ;;  %v689_v32 = vpop.f32.mrb[54].mxu0  ;;  %v1029_v26 = vld [vmem:[#allocation2 + $0xb8] sm:$0xff] (!%p1190_p12) }
 0x1e6   : > { %v914_v34 = vpop.f32.mrb[54].mxu1  ;;  %v691_v35 = vpop.f32.mrb[55].mxu0  ;;  %1061 = vst [vmem:[#allocation8 + $0xb8] sm:$0xff] (!%p1190_p12), %v1029_v26  ;;  %v1030_v27 = vld [vmem:[#allocation2 + $0xc0] sm:$0xff] (!%p1190_p12) }
 0x1e7   : > { %996 = vst [vmem:[#allocation2 + $0xd0] sm:$0xff] %v964_v31  ;;  %v915_v36 = vadd.f32 %v914_v34, %v689_v32  ;;  %v916_v37 = vpop.f32.mrb[55].mxu1  ;;  %1062 = vst [vmem:[#allocation8 + $0xc0] sm:$0xff] (!%p1190_p12), %v1030_v27 }
 0x1e9   : > { %v965_v38 = vadd.f32 %v915_v36, %v291_v33  ;;  %v694_v39 = vpop.f32.mrb[56].mxu0 }
 0x1ea   : > { %v919_v41 = vpop.f32.mrb[56].mxu1  ;;  %v696_v42 = vpop.f32.mrb[57].mxu0  ;;  %v1031_v28 = vld [vmem:[#allocation2 + $0xc8] sm:$0xff] (!%p1190_p12) }
 0x1eb   : > { %997 = vst [vmem:[#allocation2 + $0xd8] sm:$0xff] %v965_v38  ;;  %v920_v43 = vadd.f32 %v919_v41, %v694_v39  ;;  %v921_v4 = vpop.f32.mrb[57].mxu1  ;;  %1063 = vst [vmem:[#allocation8 + $0xc8] sm:$0xff] (!%p1190_p12), %v1031_v28 }
 0x1ed   : > { %v966_v44 = vadd.f32 %v920_v43, %v292_v40  ;;  %v699_v45 = vpop.f32.mrb[58].mxu0 }
 0x1ee   : > { %v924_v47 = vpop.f32.mrb[58].mxu1  ;;  %v701_v48 = vpop.f32.mrb[59].mxu0  ;;  %v1032_v29 = vld [vmem:[#allocation2 + $0xd0] sm:$0xff] (!%p1190_p12) }
 0x1ef   : > { %998 = vst [vmem:[#allocation2 + $0xe0] sm:$0xff] %v966_v44  ;;  %v925_v49 = vadd.f32 %v924_v47, %v699_v45  ;;  %v926_v50 = vpop.f32.mrb[59].mxu1  ;;  %1064 = vst [vmem:[#allocation8 + $0xd0] sm:$0xff] (!%p1190_p12), %v1032_v29 }
 0x1f1   : > { %v967_v51 = vadd.f32 %v925_v49, %v293_v46  ;;  %v704_v52 = vpop.f32.mrb[60].mxu0 }
 0x1f2   : > { %v929_v54 = vpop.f32.mrb[60].mxu1  ;;  %v706_v55 = vpop.f32.mrb[61].mxu0  ;;  %v1033_v30 = vld [vmem:[#allocation2 + $0xd8] sm:$0xff] (!%p1190_p12) }
 0x1f3   : > { %999 = vst [vmem:[#allocation2 + $0xe8] sm:$0xff] %v967_v51  ;;  %v930_v56 = vadd.f32 %v929_v54, %v704_v52  ;;  %v931_v57 = vpop.f32.mrb[61].mxu1  ;;  %1065 = vst [vmem:[#allocation8 + $0xd8] sm:$0xff] (!%p1190_p12), %v1033_v30 }
 0x1f5   : > { %v968_v58 = vadd.f32 %v930_v56, %v294_v53  ;;  %v709_v59 = vpop.f32.mrb[62].mxu0  ;;  %1005 = sbr.rel (%p1190_p12) target bundleno = 516 (0x204), region = 44 }
 0x1f6   : > { %v934_v61 = vpop.f32.mrb[62].mxu1  ;;  %v711_v62 = vpop.f32.mrb[63].mxu0  ;;  %v1034_v31 = vld [vmem:[#allocation2 + $0xe0] sm:$0xff] (!%p1190_p12) }
 0x1f7   : > { %1000 = vst [vmem:[#allocation2 + $0xf0] sm:$0xff] %v968_v58  ;;  %v935_v63 = vadd.f32 %v934_v61, %v709_v59  ;;  %v936_v0 = vpop.f32.mrb[63].mxu1  ;;  %1066 = vst [vmem:[#allocation8 + $0xe0] sm:$0xff] (!%p1190_p12), %v1034_v31 }
 0x1f9   : > { %v969_v1 = vadd.f32 %v935_v63, %v295_v60 }
 0x1fa   : > { %v1035_v32 = vld [vmem:[#allocation2 + $0xe8] sm:$0xff] (!%p1190_p12) }
 0x1fb   : > { %1001 = vst [vmem:[#allocation2 + $0xf8] sm:$0xff] %v969_v1  ;;  %1067 = vst [vmem:[#allocation8 + $0xe8] sm:$0xff] (!%p1190_p12), %v1035_v32 }
 0x1fe   : > { %v1036_v33 = vld [vmem:[#allocation2 + $0xf0] sm:$0xff] }
 0x1ff   : > { %1068 = vst [vmem:[#allocation8 + $0xf0] sm:$0xff] %v1036_v33 }
 0x202   : > { %v1037_v34 = vld [vmem:[#allocation2 + $0xf8] sm:$0xff] }
 0x203   : > { %1069 = vst [vmem:[#allocation8 + $0xf8] sm:$0xff] %v1037_v34 }
 0x204 PF: > { %p1927_p4 = scmp.eq.s32.totalorder %s1177_s15, 2  ;;  %s1524_s20 = smov [#allocation8]  }
 0x205   : > { %s1080_s5 = sshll.u32 %s1524_s20, 4  ;;  %s1081_s5 = int_to_ptr.vmem [resolvable:$true] %s1080_s5 }
 0x206   : > { %s1429_s8 = scalar_lea.vmem %s1081_s5, 4096  ;;  %p1436_p0 = scmp.lt.s32.totalorder %s1081_s5, %s1081_s5 }
 0x207   : > { %p1430_p8 = scmp.ne.s32.totalorder %s1081_s5, %s1429_s8  ;;  %p1437_p10 = scmp.lt.s32.totalorder %s1429_s8, %s1429_s8 }
 0x209   : > { %p1431_p2 = pnand %p1430_p8, %p1927_p4  ;;  %p1438_p5 = por %p1437_p10, %p1436_p0 }
 0x20b   : > { %p1432_p3 = pneg %p1431_p2 }
 0x20d   : > { %p1439_p6 = pnand %p1438_p5, %p1432_p3 }
 0x20f   : > { %1442 = shalt.err (!%p1439_p6)
}
 0x210   : > { %s1443_s15 = scalar_lea.hbm %s1973_s2, 4096 }
 0x211   : > { %p1444_p11 = scmp.ne.s32.totalorder %s1973_s2, %s1443_s15  ;;  %p1449_p7 = scmp.lt.u32.totalorder %s1443_s15, %s1973_s2 }
 0x213   : > { %p1445_p13 = pnand %p1444_p11, %p1927_p4 }
 0x215   : > { %p1446_p1 = pneg %p1445_p13 }
 0x217   : > { %p1451_p9 = pnand %p1449_p7, %p1446_p1 }
 0x219   : > { %1454 = shalt.err (!%p1451_p9)
}
 0x21a   : > { %s1525_s28 = smov 128   ;;  %s1526_s4 = smov 8  }
 0x21b   : > { %1298 = dma.vmem_to_hbm [thread:$0]  (%p1927_p4), %s1081_s5, 4096, %s1973_s2, [#allocation5], %s1525_s28, %s1525_s28, %s1526_s4  }
 0x21c   : > { %1488 = dma.done.wait (%p1927_p4), [#allocation5], 4096  }
 0x21d   : > { %1490 = vsyncadd (%p1927_p4), [#allocation5], 4294963200 }
 0x21e PF: > { %s19_s14 = sadd.s32 1, %s1513_s14   ;;  %s1982_s9 = smov %s1497_s10 }
 0x21f   : > { %p16_p12 = scmp.ge.s32.totalorder %s19_s14, 5   ;;  %s1983_s10 = smov %s1501_s11 }
 0x220   : > { %s1984_s11 = smov %s1593_s21  ;;  %s1985_s12 = smov %s1509_s13 }
 0x221   : > { %s1986_s13 = smov %s1988_s16  ;;  %18 = sbr.rel (!%p16_p12) target bundleno = 7 (0x7), region = 87 }
 0x228   :  { %1096 = vsyncpa [#allocation4], 1 }
 0x229   :  { %1098 = vsyncpa [#allocation4 + $0x1], 1 }
 0x22a   :  { %1099 = vsyncpa [#allocation7], 1 }
 0x22b   :  { %1101 = vsyncpa [#allocation7 + $0x1], 1 }
 0x22c   :  { %1102 = vsyncpa [#allocation5], 1 }
 0x22d   :  { %1104 = vsyncpa [#allocation5 + $0x1], 1 }

</bundles_post_ra>
